<compile_context>
chip_gen: v7x
topology: tpu7x:2x2x1
jax: 0.10.0
libtpu: 0.0.40
codegen_flags: <defaults>
</compile_context>

<pallas_src>
import jax
import jax.numpy as jnp
from jax.experimental import pallas as pl
from jax.experimental.pallas import tpu as pltpu

# Problem sizes (TPU-tile friendly: lane dims are 128-multiples or full extent).
BATCH = 256
INPUT_DIM = 256
HIDDEN_DIM = 128
LATENT_DIM = 32


def _round_up(x, m):
    return ((x + m - 1) // m) * m


def _bias_layout(H, D, slab):
    """Packed-bias column offsets: [ b1(H) | bhead(slab) | b2(H) | b3(D) ]."""
    b1_off = 0
    bh_off = H
    b2_off = H + slab
    b3_off = H + slab + H
    total = 2 * H + slab + D
    return b1_off, bh_off, b2_off, b3_off, total


def _tensorcores_per_chip():
    """Best-effort TC count per Pallas-visible device (perf heuristic only)."""
    try:
        kind = jax.devices()[0].device_kind.lower()
    except Exception:
        return 1
    if any(tag in kind for tag in ("v7", "v4", "v5p")):
        return 2      # dual-TensorCore / megacore chips: shard the batch grid
    return 1          # v5e / v6e: single TC -> minimize grid-step count


def _pick_tile_b(batch, cores):
    """Largest useful batch tile: one step on 1-TC chips, an even split on 2-TC."""
    bp = _round_up(max(batch, 8), 8)
    if cores <= 1:
        return min(bp, 512)
    per_core = _round_up(pl.cdiv(bp, cores), 8)
    return max(8, min(per_core, 512))


def _vae_kernel(x_ref, eps_ref, w1_ref, wh_ref, w2_ref, w3_ref, b_ref,
                xhat_ref, lat_ref):
    TB, D = x_ref.shape
    L = eps_ref.shape[1]
    H = w1_ref.shape[1]
    SLAB = lat_ref.shape[1]                     # 128-lane latent slab width
    b1_off, bh_off, b2_off, b3_off, _ = _bias_layout(H, D, SLAB)

    x_bf = x_ref[...].astype(jnp.bfloat16)      # (TB, D) bf16 for the MXU
    eps = eps_ref[...]                          # (TB, L) f32

    # ---- Encoder hidden: bf16 matmul, f32 accumulate + bias + ReLU ----
    h = jnp.dot(x_bf, w1_ref[...], preferred_element_type=jnp.float32)
    h = jnp.maximum(h + b_ref[:, b1_off:b1_off + H], 0.0)

    # ---- Fused (mu | log_var | 0) head: f32, full 128-lane output ----
    # wh is zero-padded to SLAB columns on the host, so head[:, 2L:] == 0.
    head = jnp.dot(h, wh_ref[...], preferred_element_type=jnp.float32)
    head = head + b_ref[:, bh_off:bh_off + SLAB]
    mu = head[:, 0:L]
    log_var = head[:, L:2 * L]

    # ---- Reparameterize: z = eps * exp(0.5 * log_var) + mu ----
    z = eps * jnp.exp(0.5 * log_var) + mu

    # ---- Latent slab [ z | mu | log_var | 0 ] via sliced stores ----
    # head[:, 0:SLAB-L] is exactly (mu | log_var | zero-pad), so two stores
    # cover the whole slab with no concatenate temp.
    lat_ref[:, L:] = head[:, 0:SLAB - L]
    lat_ref[:, 0:L] = z

    # ---- Decoder layer 1, K=128-aligned ----
    # Reuse the lane-dense slab as the operand; w2 rows L:SLAB are zero so
    # mu / log_var / padding contribute nothing.
    lat_bf = lat_ref[...].astype(jnp.bfloat16)
    h2 = jnp.dot(lat_bf, w2_ref[...], preferred_element_type=jnp.float32)
    h2 = jnp.maximum(h2 + b_ref[:, b2_off:b2_off + H], 0.0)

    # ---- Decoder output layer + exact sigmoid ----
    logits = jnp.dot(h2.astype(jnp.bfloat16), w3_ref[...],
                     preferred_element_type=jnp.float32)
    logits = logits + b_ref[:, b3_off:b3_off + D]
    xhat_ref[...] = 1.0 / (1.0 + jnp.exp(-logits))   # exact: x_hat in (0,1) for BCE


def vae_forward(x, eps, params, tile_b=None):
    """Fused VAE forward. Returns (x_hat, z, mu, log_var) like the PyTorch module."""
    B, D = x.shape
    L = eps.shape[1]
    H = params["w1"].shape[1]
    slab = max(128, _round_up(3 * L, 128))          # lane-dense latent slab width
    assert 2 * L <= slab and 3 * L <= slab
    b1_off, bh_off, b2_off, b3_off, bias_cols = _bias_layout(H, D, slab)

    # ---- Batch tiling (per-chip): pad B up to a multiple of tile_b ----
    if tile_b is None:
        tile_b = _pick_tile_b(B, _tensorcores_per_chip())
    tile_b = min(tile_b, _round_up(B, 8))
    num_tiles = pl.cdiv(B, tile_b)
    Bp = num_tiles * tile_b
    if Bp != B:
        x = jnp.pad(x, ((0, Bp - B), (0, 0)))
        eps = jnp.pad(eps, ((0, Bp - B), (0, 0)))

    # ---- Weight prep ----
    # w1 / w2 / w3 in bf16 (native MXU path, half the weight DMA); the fused
    # head stays f32 and is zero-padded to a full 128-lane output.
    w1 = params["w1"].astype(jnp.bfloat16)                           # (D, H)
    wh = jnp.concatenate([params["wmu"], params["wlv"]], axis=1)     # (H, 2L) f32
    wh_pad = jnp.zeros((H, slab), jnp.float32).at[:, :2 * L].set(wh)  # (H, slab)
    w2_pad = jnp.zeros((slab, H), jnp.bfloat16).at[:L, :].set(
        params["w2"].astype(jnp.bfloat16))                           # (slab, H)
    w3 = params["w3"].astype(jnp.bfloat16)                           # (H, D)

    bias_pack = jnp.zeros((1, bias_cols), jnp.float32)
    bias_pack = bias_pack.at[:, b1_off:b1_off + H].set(params["b1"])
    bias_pack = bias_pack.at[:, bh_off:bh_off + 2 * L].set(
        jnp.concatenate([params["bmu"], params["blv"]], axis=1))
    bias_pack = bias_pack.at[:, b2_off:b2_off + H].set(params["b2"])
    bias_pack = bias_pack.at[:, b3_off:b3_off + D].set(params["b3"])

    # ---- VMEM budget: resident weights (x2 safety) + double-buffered tile I/O ----
    weight_bytes = sum(int(a.size) * a.dtype.itemsize
                       for a in (w1, wh_pad, w2_pad, w3, bias_pack))
    tile_io_bytes = tile_b * 4 * (D + L + D + slab)
    vmem_limit = 2 * weight_bytes + 2 * 2 * tile_io_bytes + (8 << 20)
    vmem_limit = int(min(max(vmem_limit, 16 << 20), 64 << 20))   # fits v7x physical VMEM

    in_specs = [
        pl.BlockSpec((tile_b, D), lambda i: (i, 0)),          # x tile
        pl.BlockSpec((tile_b, L), lambda i: (i, 0)),          # eps tile
        pl.BlockSpec((D, H), lambda i: (0, 0)),               # w1 (pinned)
        pl.BlockSpec((H, slab), lambda i: (0, 0)),            # fused head weight (f32)
        pl.BlockSpec((slab, H), lambda i: (0, 0)),            # w2 (K=128-padded)
        pl.BlockSpec((H, D), lambda i: (0, 0)),               # w3
        pl.BlockSpec((1, bias_cols), lambda i: (0, 0)),       # packed biases
    ]
    out_specs = (
        pl.BlockSpec((tile_b, D), lambda i: (i, 0)),          # x_hat (lane-dense)
        pl.BlockSpec((tile_b, slab), lambda i: (i, 0)),       # z|mu|log_var slab
    )
    out_shape = (
        # x_hat kept f32 to preserve the module's output precision (it feeds a
        # BCE loss); switch to bf16 here if the consumer tolerates it to halve
        # the largest HBM writeback.
        jax.ShapeDtypeStruct((Bp, D), jnp.float32),
        jax.ShapeDtypeStruct((Bp, slab), jnp.float32),
    )

    x_hat, lat = pl.pallas_call(
        _vae_kernel,
        out_shape=out_shape,
        grid=(num_tiles,),
        in_specs=in_specs,
        out_specs=out_specs,
        compiler_params=pltpu.CompilerParams(
            dimension_semantics=("parallel",),   # shard batch tiles across TCs (v7x)
            vmem_limit_bytes=vmem_limit),
    )(x, eps, w1, wh_pad, w2_pad, w3, bias_pack)

    x_hat = x_hat[:B]
    z = lat[:B, 0:L]
    mu = lat[:B, L:2 * L]
    log_var = lat[:B, 2 * L:3 * L]
    return x_hat, z, mu, log_var


def init_params(key, input_dim, hidden_dim, latent_dim):
    """Deterministic synthetic parameter init (scaled normal, zero biases)."""
    ks = jax.random.split(key, 5)

    def lin(k, fan_in, fan_out):
        scale = 1.0 / jnp.sqrt(jnp.float32(fan_in))
        w = scale * jax.random.normal(k, (fan_in, fan_out), dtype=jnp.float32)
        b = jnp.zeros((1, fan_out), dtype=jnp.float32)
        return w, b

    w1, b1 = lin(ks[0], input_dim, hidden_dim)
    wmu, bmu = lin(ks[1], hidden_dim, latent_dim)
    wlv, blv = lin(ks[2], hidden_dim, latent_dim)
    w2, b2 = lin(ks[3], latent_dim, hidden_dim)
    w3, b3 = lin(ks[4], hidden_dim, input_dim)
    return dict(w1=w1, b1=b1, wmu=wmu, bmu=bmu, wlv=wlv, blv=blv,
                w2=w2, b2=b2, w3=w3, b3=b3)


def reference_forward(x, eps, p):
    """Pure-JAX f32 reference matching the PyTorch module semantics."""
    h = jnp.maximum(x @ p["w1"] + p["b1"], 0.0)
    mu = h @ p["wmu"] + p["bmu"]
    log_var = h @ p["wlv"] + p["blv"]
    z = eps * jnp.exp(0.5 * log_var) + mu
    h2 = jnp.maximum(z @ p["w2"] + p["b2"], 0.0)
    x_hat = jax.nn.sigmoid(h2 @ p["w3"] + p["b3"])
    return x_hat, z, mu, log_var


if __name__ == "__main__":
    key = jax.random.PRNGKey(0)
    k_x, k_eps, k_p = jax.random.split(key, 3)

    # Inputs in [0, 1] (consistent with the module's BCE reconstruction loss).
    x = jax.random.uniform(k_x, (BATCH, INPUT_DIM), dtype=jnp.float32)
    eps = jax.random.normal(k_eps, (BATCH, LATENT_DIM), dtype=jnp.float32)
    params = init_params(k_p, INPUT_DIM, HIDDEN_DIM, LATENT_DIM)

    x_hat, z, mu, log_var = vae_forward(x, eps, params)
    jax.block_until_ready((x_hat, z, mu, log_var))

    # Numerical check vs the f32 reference (bf16 matmuls -> loose tolerance).
    r_xhat, r_z, r_mu, r_lv = reference_forward(x, eps, params)
    assert x_hat.shape == (BATCH, INPUT_DIM) and z.shape == (BATCH, LATENT_DIM)
    assert jnp.all((x_hat >= 0.0) & (x_hat <= 1.0))       # exact sigmoid: BCE-safe
    assert jnp.allclose(x_hat, r_xhat, atol=5e-2, rtol=5e-2)
    assert jnp.allclose(z, r_z, atol=5e-2, rtol=5e-2)
    assert jnp.allclose(mu, r_mu, atol=5e-2, rtol=5e-2)
    assert jnp.allclose(log_var, r_lv, atol=5e-2, rtol=5e-2)

    print("KERNEL_OK")
</pallas_src>

<mosaic_0001>
module attributes {stable_mosaic.version = 11 : i64} {
  func.func @_vae_kernel(%arg0: i32, %arg1: memref<256x256xf32, #tpu.memory_space<vmem>>, %arg2: memref<256x32xf32, #tpu.memory_space<vmem>>, %arg3: memref<256x128xbf16, #tpu.memory_space<vmem>>, %arg4: memref<128x128xf32, #tpu.memory_space<vmem>>, %arg5: memref<128x128xbf16, #tpu.memory_space<vmem>>, %arg6: memref<128x256xbf16, #tpu.memory_space<vmem>>, %arg7: memref<1x640xf32, #tpu.memory_space<vmem>>, %arg8: memref<256x256xf32, #tpu.memory_space<vmem>>, %arg9: memref<256x128xf32, #tpu.memory_space<vmem>>) attributes {dimension_semantics = [#tpu.dimension_semantics<parallel>], iteration_bounds = array<i64: 1>, scalar_prefetch = 0 : i64, scratch_operands = 0 : i64, tpu.core_type = #tpu.core_type<tc>, window_params = [{transform_indices = @transform_0, window_bounds = array<i64: 256, 256>}, {transform_indices = @transform_1, window_bounds = array<i64: 256, 32>}, {pipeline_mode = #tpu.pipeline_mode<synchronous>, transform_indices = @transform_2, window_bounds = array<i64: 256, 128>}, {pipeline_mode = #tpu.pipeline_mode<synchronous>, transform_indices = @transform_3, window_bounds = array<i64: 128, 128>}, {pipeline_mode = #tpu.pipeline_mode<synchronous>, transform_indices = @transform_4, window_bounds = array<i64: 128, 128>}, {pipeline_mode = #tpu.pipeline_mode<synchronous>, transform_indices = @transform_5, window_bounds = array<i64: 128, 256>}, {pipeline_mode = #tpu.pipeline_mode<synchronous>, transform_indices = @transform_6, window_bounds = array<i64: 1, 640>}, {transform_indices = @transform_7, window_bounds = array<i64: 256, 256>}, {transform_indices = @transform_8, window_bounds = array<i64: 256, 128>}]} {
    %c0 = arith.constant 0 : index
    %c0_0 = arith.constant 0 : index
    %0 = vector.load %arg1[%c0, %c0_0] : memref<256x256xf32, #tpu.memory_space<vmem>>, vector<256x256xf32>
    %1 = arith.truncf %0 : vector<256x256xf32> to vector<256x256xbf16>
    %c0_1 = arith.constant 0 : index
    %c0_2 = arith.constant 0 : index
    %2 = vector.load %arg2[%c0_1, %c0_2] : memref<256x32xf32, #tpu.memory_space<vmem>>, vector<256x32xf32>
    %c0_3 = arith.constant 0 : index
    %c0_4 = arith.constant 0 : index
    %3 = vector.load %arg3[%c0_3, %c0_4] : memref<256x128xbf16, #tpu.memory_space<vmem>>, vector<256x128xbf16>
    %cst = arith.constant dense<0.000000e+00> : vector<256x128xf32>
    %4 = tpu.matmul %1, %3, %cst {dimension_numbers = #tpu.dot_dimension_numbers<[1], [0], [0], [1], [0, 0, 1, 1], [], []>} : vector<256x256xbf16>, vector<256x128xbf16>, vector<256x128xf32> -> vector<256x128xf32>
    %c0_5 = arith.constant 0 : index
    %c0_6 = arith.constant 0 : index
    %5 = vector.load %arg7[%c0_5, %c0_6] : memref<1x640xf32, #tpu.memory_space<vmem>>, vector<1x128xf32>
    %6 = vector.broadcast %5 : vector<1x128xf32> to vector<256x128xf32>
    %7 = arith.addf %4, %6 : vector<256x128xf32>
    %cst_7 = arith.constant 0.000000e+00 : f32
    %8 = vector.broadcast %cst_7 : f32 to vector<256x128xf32>
    %9 = arith.maximumf %7, %8 : vector<256x128xf32>
    %c0_8 = arith.constant 0 : index
    %c0_9 = arith.constant 0 : index
    %10 = vector.load %arg4[%c0_8, %c0_9] : memref<128x128xf32, #tpu.memory_space<vmem>>, vector<128x128xf32>
    %cst_10 = arith.constant dense<0.000000e+00> : vector<256x128xf32>
    %11 = tpu.matmul %9, %10, %cst_10 {dimension_numbers = #tpu.dot_dimension_numbers<[1], [0], [0], [1], [0, 0, 1, 1], [], []>} : vector<256x128xf32>, vector<128x128xf32>, vector<256x128xf32> -> vector<256x128xf32>
    %c0_11 = arith.constant 0 : index
    %c128 = arith.constant 128 : index
    %12 = vector.load %arg7[%c0_11, %c128] : memref<1x640xf32, #tpu.memory_space<vmem>>, vector<1x128xf32>
    %13 = vector.broadcast %12 : vector<1x128xf32> to vector<256x128xf32>
    %14 = arith.addf %11, %13 : vector<256x128xf32>
    %15 = vector.extract_strided_slice %14 {offsets = [0, 0], sizes = [256, 32], strides = [1, 1]} : vector<256x128xf32> to vector<256x32xf32>
    %16 = vector.extract_strided_slice %14 {offsets = [0, 32], sizes = [256, 32], strides = [1, 1]} : vector<256x128xf32> to vector<256x32xf32>
    %cst_12 = arith.constant 5.000000e-01 : f32
    %17 = vector.broadcast %cst_12 : f32 to vector<256x32xf32>
    %18 = arith.mulf %17, %16 : vector<256x32xf32>
    %19 = math.exp %18 : vector<256x32xf32>
    %20 = arith.mulf %2, %19 : vector<256x32xf32>
    %21 = arith.addf %20, %15 : vector<256x32xf32>
    %22 = vector.extract_strided_slice %14 {offsets = [0, 0], sizes = [256, 96], strides = [1, 1]} : vector<256x128xf32> to vector<256x96xf32>
    %c0_13 = arith.constant 0 : index
    %c32 = arith.constant 32 : index
    %23 = vector.load %arg9[%c0_13, %c32] : memref<256x128xf32, #tpu.memory_space<vmem>>, vector<256x96xf32>
    tpu.vector_store %arg9[%c0_13, %c32], %22 {strides = array<i32>} : memref<256x128xf32, #tpu.memory_space<vmem>>, vector<256x96xf32>,
    %c0_14 = arith.constant 0 : index
    %c0_15 = arith.constant 0 : index
    %24 = vector.load %arg9[%c0_14, %c0_15] : memref<256x128xf32, #tpu.memory_space<vmem>>, vector<256x32xf32>
    tpu.vector_store %arg9[%c0_14, %c0_15], %21 {strides = array<i32>} : memref<256x128xf32, #tpu.memory_space<vmem>>, vector<256x32xf32>,
    %c0_16 = arith.constant 0 : index
    %c0_17 = arith.constant 0 : index
    %25 = vector.load %arg9[%c0_16, %c0_17] : memref<256x128xf32, #tpu.memory_space<vmem>>, vector<256x128xf32>
    %26 = arith.truncf %25 : vector<256x128xf32> to vector<256x128xbf16>
    %c0_18 = arith.constant 0 : index
    %c0_19 = arith.constant 0 : index
    %27 = vector.load %arg5[%c0_18, %c0_19] : memref<128x128xbf16, #tpu.memory_space<vmem>>, vector<128x128xbf16>
    %cst_20 = arith.constant dense<0.000000e+00> : vector<256x128xf32>
    %28 = tpu.matmul %26, %27, %cst_20 {dimension_numbers = #tpu.dot_dimension_numbers<[1], [0], [0], [1], [0, 0, 1, 1], [], []>} : vector<256x128xbf16>, vector<128x128xbf16>, vector<256x128xf32> -> vector<256x128xf32>
    %c0_21 = arith.constant 0 : index
    %c256 = arith.constant 256 : index
    %29 = vector.load %arg7[%c0_21, %c256] : memref<1x640xf32, #tpu.memory_space<vmem>>, vector<1x128xf32>
    %30 = vector.broadcast %29 : vector<1x128xf32> to vector<256x128xf32>
    %31 = arith.addf %28, %30 : vector<256x128xf32>
    %cst_22 = arith.constant 0.000000e+00 : f32
    %32 = vector.broadcast %cst_22 : f32 to vector<256x128xf32>
    %33 = arith.maximumf %31, %32 : vector<256x128xf32>
    %34 = arith.truncf %33 : vector<256x128xf32> to vector<256x128xbf16>
    %c0_23 = arith.constant 0 : index
    %c0_24 = arith.constant 0 : index
    %35 = vector.load %arg6[%c0_23, %c0_24] : memref<128x256xbf16, #tpu.memory_space<vmem>>, vector<128x256xbf16>
    %cst_25 = arith.constant dense<0.000000e+00> : vector<256x256xf32>
    %36 = tpu.matmul %34, %35, %cst_25 {dimension_numbers = #tpu.dot_dimension_numbers<[1], [0], [0], [1], [0, 0, 1, 1], [], []>} : vector<256x128xbf16>, vector<128x256xbf16>, vector<256x256xf32> -> vector<256x256xf32>
    %c0_26 = arith.constant 0 : index
    %c384 = arith.constant 384 : index
    %37 = vector.load %arg7[%c0_26, %c384] : memref<1x640xf32, #tpu.memory_space<vmem>>, vector<1x256xf32>
    %38 = vector.broadcast %37 : vector<1x256xf32> to vector<256x256xf32>
    %39 = arith.addf %36, %38 : vector<256x256xf32>
    %cst_27 = arith.constant 0.000000e+00 : f32
    %40 = vector.broadcast %cst_27 : f32 to vector<256x256xf32>
    %41 = arith.subf %40, %39 : vector<256x256xf32>
    %42 = math.exp %41 : vector<256x256xf32>
    %cst_28 = arith.constant 1.000000e+00 : f32
    %43 = vector.broadcast %cst_28 : f32 to vector<256x256xf32>
    %44 = arith.addf %43, %42 : vector<256x256xf32>
    %cst_29 = arith.constant 1.000000e+00 : f32
    %45 = vector.broadcast %cst_29 : f32 to vector<256x256xf32>
    %46 = arith.divf %45, %44 : vector<256x256xf32>
    %c0_30 = arith.constant 0 : index
    %c0_31 = arith.constant 0 : index
    %47 = vector.load %arg8[%c0_30, %c0_31] : memref<256x256xf32, #tpu.memory_space<vmem>>, vector<256x256xf32>
    tpu.vector_store %arg8[%c0_30, %c0_31], %46 {strides = array<i32>} : memref<256x256xf32, #tpu.memory_space<vmem>>, vector<256x256xf32>,
    return
  }
  func.func @transform_0(%arg0: i32) -> (i32, i32) {
    %c0_i32 = arith.constant 0 : i32
    %c0_i32_0 = arith.constant 0 : i32
    return %arg0, %c0_i32 : i32, i32
  }
  func.func @transform_1(%arg0: i32) -> (i32, i32) {
    %c0_i32 = arith.constant 0 : i32
    %c0_i32_0 = arith.constant 0 : i32
    return %arg0, %c0_i32 : i32, i32
  }
  func.func @transform_2(%arg0: i32) -> (i32, i32) {
    %c0_i32 = arith.constant 0 : i32
    %c0_i32_0 = arith.constant 0 : i32
    %c0_i32_1 = arith.constant 0 : i32
    return %c0_i32, %c0_i32_0 : i32, i32
  }
  func.func @transform_3(%arg0: i32) -> (i32, i32) {
    %c0_i32 = arith.constant 0 : i32
    %c0_i32_0 = arith.constant 0 : i32
    %c0_i32_1 = arith.constant 0 : i32
    return %c0_i32, %c0_i32_0 : i32, i32
  }
  func.func @transform_4(%arg0: i32) -> (i32, i32) {
    %c0_i32 = arith.constant 0 : i32
    %c0_i32_0 = arith.constant 0 : i32
    %c0_i32_1 = arith.constant 0 : i32
    return %c0_i32, %c0_i32_0 : i32, i32
  }
  func.func @transform_5(%arg0: i32) -> (i32, i32) {
    %c0_i32 = arith.constant 0 : i32
    %c0_i32_0 = arith.constant 0 : i32
    %c0_i32_1 = arith.constant 0 : i32
    return %c0_i32, %c0_i32_0 : i32, i32
  }
  func.func @transform_6(%arg0: i32) -> (i32, i32) {
    %c0_i32 = arith.constant 0 : i32
    %c0_i32_0 = arith.constant 0 : i32
    %c0_i32_1 = arith.constant 0 : i32
    return %c0_i32, %c0_i32_0 : i32, i32
  }
  func.func @transform_7(%arg0: i32) -> (i32, i32) {
    %c0_i32 = arith.constant 0 : i32
    %c0_i32_0 = arith.constant 0 : i32
    return %arg0, %c0_i32 : i32, i32
  }
  func.func @transform_8(%arg0: i32) -> (i32, i32) {
    %c0_i32 = arith.constant 0 : i32
    %c0_i32_0 = arith.constant 0 : i32
    return %arg0, %c0_i32 : i32, i32
  }
}

</mosaic_0001>

<bundles_post_ra>
// kernel: tpu_custom_call.1
= control target key start
LH: loop header
LB: loop body
LE: loop exit
PB: predicated region body
PF: predicated region fallthrough
CT: control target
= control target key end

     0   :  { %14 = vsyncpa [#allocation3], 0  ;;  %s4088_s0 = inlined_call_operand.hbm [shape: f32[256,256], index: 0, kind: input, shape index: {}]   ;;  %s4089_s1 = inlined_call_operand.vmem [shape: f32[256,32], index: 1, kind: input, shape index: {}]   ;;  %s4090_s2 = inlined_call_operand.vmem [shape: bf16[256,128], index: 2, kind: input, shape index: {}]   ;;  %s4091_s3 = inlined_call_operand.vmem [shape: f32[128,128], index: 3, kind: input, shape index: {}]   ;;  %s4092_s4 = inlined_call_operand.vmem [shape: bf16[128,128], index: 4, kind: input, shape index: {}]   ;;  %s4093_s5 = inlined_call_operand.hbm [shape: bf16[128,256], index: 5, kind: input, shape index: {}]   ;;  %s4094_s6 = inlined_call_operand.vmem [shape: f32[1,640], index: 6, kind: input, shape index: {}]   ;;  %s4095_s7 = inlined_call_operand.hbm [shape: f32[256,256], index: 7, kind: output, shape index: {0}]   ;;  %s4096_s8 = inlined_call_operand.hbm [shape: f32[256,128], index: 8, kind: output, shape index: {1}]  }
   0x1   :  { %15 = vsyncpa [#allocation6], 0 }
   0x2   :  { %16 = vsyncpa [#allocation4], 0 }
   0x3   :  { %17 = vsyncpa [#allocation9], 0  ;;  %s3234_s27 = smov [#allocation2]   ;;  %s3138_s9 = scalar_lea.hbm %s4088_s0, 8192 }
   0x4   :  { %s23_s28 = sshll.u32 %s3234_s27, 4  ;;  %p3139_p0 = scmp.ne.s32.totalorder %s4088_s0, %s3138_s9  ;;  %s24_s28 = int_to_ptr.vmem [resolvable:$true] %s23_s28 }
   0x5   :  { %p3142_p1 = scmp.lt.u32.totalorder %s3138_s9, %s4088_s0 }
   0x7   :  { %p3144_p2 = pnand %p3142_p1, %p3139_p0 }
   0x9   :  { %3147 = shalt.err (!%p3144_p2)
}
   0xa   :  { %s3148_s14 = scalar_lea.vmem %s24_s28, 8192  ;;  %p3153_p4 = scmp.lt.s32.totalorder %s24_s28, %s24_s28 }
   0xb   :  { %p3149_p3 = scmp.ne.s32.totalorder %s24_s28, %s3148_s14  ;;  %p3154_p5 = scmp.lt.s32.totalorder %s3148_s14, %s3148_s14 }
   0xd   :  { %p3155_p6 = por %p3154_p5, %p3153_p4 }
   0xf   :  { %p3156_p7 = pnand %p3155_p6, %p3149_p3 }
  0x11   :  { %3159 = shalt.err (!%p3156_p7)
}
  0x12   :  { %s3235_s15 = smov 256   ;;  %s3236_s16 = smov 16  }
  0x13   :  { %29 = dma.hbm_to_vmem [thread:$0]  %s4088_s0, 8192, %s24_s28, [#allocation3], %s3235_s15, %s3235_s15, %s3236_s16  }
  0x14   :  { %s3237_s19 = smov [#allocation5]   ;;  %s3160_s23 = scalar_lea.hbm %s4093_s5, 2048 }
  0x15   :  { %s43_s20 = sshll.u32 %s3237_s19, 4  ;;  %p3161_p8 = scmp.ne.s32.totalorder %s4093_s5, %s3160_s23  ;;  %s44_s20 = int_to_ptr.vmem [resolvable:$true] %s43_s20 }
  0x16   :  { %p3164_p9 = scmp.lt.u32.totalorder %s3160_s23, %s4093_s5 }
  0x18   :  { %p3166_p10 = pnand %p3164_p9, %p3161_p8 }
  0x1a   :  { %3169 = shalt.err (!%p3166_p10)
}
  0x1b   :  { %s3170_s29 = scalar_lea.vmem %s44_s20, 2048  ;;  %p3175_p12 = scmp.lt.s32.totalorder %s44_s20, %s44_s20 }
  0x1c   :  { %p3171_p11 = scmp.ne.s32.totalorder %s44_s20, %s3170_s29  ;;  %p3176_p13 = scmp.lt.s32.totalorder %s3170_s29, %s3170_s29 }
  0x1e   :  { %p3177_p0 = por %p3176_p13, %p3175_p12 }
  0x20   :  { %p3178_p1 = pnand %p3177_p0, %p3171_p11 }
  0x22   :  { %3181 = shalt.err (!%p3178_p1)
}
  0x23   :  { %s3238_s0 = smov 128   ;;  %s3239_s28 = smov 8  }
  0x24   :  { %49 = dma.hbm_to_vmem [thread:$0]  %s4093_s5, 2048, %s44_s20, [#allocation6], %s3238_s0, %s3238_s0, %s3239_s28  }
  0x25   :  { %3226 = dma.done.wait [#allocation3], 8192  }
  0x26   :  { %3227 = vsyncadd [#allocation3], 4294959104 }
  0x27   :  { %3228 = dma.done.wait [#allocation6], 2048  }
  0x28   :  { %3229 = vsyncadd [#allocation6], 4294965248  ;;  %v2770_v0 = vld [vmem:[%s4090_s2 + $0x40] sm:$0xff]   ;;  %v2772_v2 = vld [vmem:[%s4090_s2 + $0x48] sm:$0xff]   ;;  %s3240_s25 = smov 32   ;;  %s3241_s9 = smov 96  }
  0x29   :  { %v2771_v1 = vld [vmem:[%s4090_s2] sm:$0xff]   ;;  %2399 = vmatprep.subr.bf16.mxu0 %v2770_v0  ;;  %2743 = vmatprep.subr.bf16.mxu1 %v2770_v0  ;;  %v2773_v3 = vld [vmem:[%s4090_s2 + $0x8] sm:$0xff]   ;;  %v2774_v4 = vld [vmem:[%s4090_s2 + $0x50] sm:$0xff]   ;;  %vm1179_vm0 = vcmask 1047808   ;;  %vm1212_vm1 = vcmask 261120  }
  0x2a   :  { %2400 = vmatpush3.bf16.msra.mxu0 %v2771_v1  ;;  %2751 = vmatpush3.bf16.msra.mxu1 %v2771_v1  ;;  %v2775_v5 = vld [vmem:[%s4090_s2 + $0x10] sm:$0xff]   ;;  %v2776_v6 = vld [vmem:[%s4090_s2 + $0x58] sm:$0xff]   ;;  %v2778_v8 = vld [vmem:[%s4090_s2 + $0x60] sm:$0xff]  }
  0x2b   :  { %2401 = vmatprep.subr.bf16.mxu0 %v2772_v2  ;;  %2744 = vmatprep.subr.bf16.mxu1 %v2772_v2  ;;  %v2777_v7 = vld [vmem:[%s4090_s2 + $0x18] sm:$0xff]   ;;  %v2779_v9 = vld [vmem:[%s4090_s2 + $0x20] sm:$0xff]   ;;  %v2780_v10 = vld [vmem:[%s4090_s2 + $0x68] sm:$0xff]  }
  0x2c   :  { %v60_v11 = vld [vmem:[#allocation2 + $0x8] sm:$0xff]  ;;  %v62_v12 = vld [vmem:[#allocation2 + $0x18] sm:$0xff]  ;;  %v2782_v15 = vld [vmem:[%s4090_s2 + $0x70] sm:$0xff]  }
  0x2d   :  { %v124_v13 = vpack.c.bf16 %v62_v12, %v60_v11  ;;  %v2781_v14 = vld [vmem:[%s4090_s2 + $0x28] sm:$0xff]   ;;  %v2783_v16 = vld [vmem:[%s4090_s2 + $0x30] sm:$0xff]   ;;  %v2784_v17 = vld [vmem:[%s4090_s2 + $0x78] sm:$0xff]  }
  0x2e   :  { %2402 = vmatpush3.bf16.msra.mxu0 %v2773_v3  ;;  %2752 = vmatpush3.bf16.msra.mxu1 %v2773_v3  ;;  %v2785_v18 = vld [vmem:[%s4090_s2 + $0x38] sm:$0xff]   ;;  %v59_v19 = vld [vmem:[#allocation2] sm:$0xff]  ;;  %v92_v20 = vld [vmem:[#allocation2 + $0x108] sm:$0xff] }
  0x2f   :  { %2403 = vmatprep.subr.bf16.mxu0 %v2774_v4  ;;  %2745 = vmatprep.subr.bf16.mxu1 %v2774_v4  ;;  %v61_v21 = vld [vmem:[#allocation2 + $0x10] sm:$0xff]  ;;  %v64_v22 = vld [vmem:[#allocation2 + $0x28] sm:$0xff]  ;;  %v94_v23 = vld [vmem:[#allocation2 + $0x118] sm:$0xff] }
  0x30   :  { %354 = vmatprep.mubr.bf16.mxu0 %v124_v13  ;;  %v66_v24 = vld [vmem:[#allocation2 + $0x38] sm:$0xff]  ;;  %v140_v25 = vpack.c.bf16 %v94_v23, %v92_v20  ;;  %v91_v26 = vld [vmem:[#allocation2 + $0x100] sm:$0xff]  ;;  %v93_v27 = vld [vmem:[#allocation2 + $0x110] sm:$0xff]  ;;  %v123_v30 = vpack.c.bf16 %v61_v21, %v59_v19 }
  0x31   :  { %v96_v28 = vld [vmem:[#allocation2 + $0x128] sm:$0xff]  ;;  %v98_v29 = vld [vmem:[#allocation2 + $0x138] sm:$0xff]  ;;  %v126_v31 = vpack.c.bf16 %v66_v24, %v64_v22  ;;  %v139_v32 = vpack.c.bf16 %v93_v27, %v91_v26  ;;  %v63_v34 = vld [vmem:[#allocation2 + $0x20] sm:$0xff] }
  0x32   :  { %2404 = vmatpush3.bf16.msra.mxu0 %v2775_v5  ;;  %2753 = vmatpush3.bf16.msra.mxu1 %v2775_v5  ;;  %v142_v33 = vpack.c.bf16 %v98_v29, %v96_v28  ;;  %v65_v35 = vld [vmem:[#allocation2 + $0x30] sm:$0xff]  ;;  %v68_v36 = vld [vmem:[#allocation2 + $0x48] sm:$0xff]  ;;  %v70_v37 = vld [vmem:[#allocation2 + $0x58] sm:$0xff] }
  0x33   :  { %2405 = vmatprep.subr.bf16.mxu0 %v2776_v6  ;;  %2746 = vmatprep.subr.bf16.mxu1 %v2776_v6  ;;  %v95_v38 = vld [vmem:[#allocation2 + $0x120] sm:$0xff]  ;;  %v97_v39 = vld [vmem:[#allocation2 + $0x130] sm:$0xff]  ;;  %v100_v40 = vld [vmem:[#allocation2 + $0x148] sm:$0xff]  ;;  %v125_v44 = vpack.c.bf16 %v65_v35, %v63_v34  ;;  %v128_v48 = vpack.c.bf16 %v70_v37, %v68_v36 }
  0x34   :  { %418 = vmatprep.mubr.bf16.mxu1 %v140_v25  ;;  %v102_v41 = vld [vmem:[#allocation2 + $0x158] sm:$0xff]  ;;  %v515_v42 = vld [vmem:[%s4091_s3] sm:$0xff]  ;;  %v516_v43 = vld [vmem:[%s4091_s3 + $0x8] sm:$0xff]  ;;  %v141_v49 = vpack.c.bf16 %v97_v39, %v95_v38 }
  0x35   :  { %v2711_v45 = vpack.c.bf16 %v516_v43, %v515_v42  ;;  %v517_v46 = vld [vmem:[%s4091_s3 + $0x10] sm:$0xff]  ;;  %v518_v47 = vld [vmem:[%s4091_s3 + $0x18] sm:$0xff]  ;;  %v519_v51 = vld [vmem:[%s4091_s3 + $0x20] sm:$0xff]  ;;  %v144_v53 = vpack.c.bf16 %v102_v41, %v100_v40 }
  0x36   :  { %2406 = vmatpush3.bf16.msra.mxu0 %v2777_v7  ;;  %2754 = vmatpush3.bf16.msra.mxu1 %v2777_v7  ;;  %v2715_v50 = vpack.c.bf16 %v518_v47, %v517_v46  ;;  %v520_v52 = vld [vmem:[%s4091_s3 + $0x28] sm:$0xff]  ;;  %v67_v54 = vld [vmem:[#allocation2 + $0x40] sm:$0xff]  ;;  %v69_v55 = vld [vmem:[#allocation2 + $0x50] sm:$0xff] }
  0x37   :  { %2407 = vmatprep.subr.bf16.mxu0 %v2778_v8  ;;  %2747 = vmatprep.subr.bf16.mxu1 %v2778_v8  ;;  %v521_v56 = vld [vmem:[%s4091_s3 + $0x30] sm:$0xff]  ;;  %v522_v57 = vld [vmem:[%s4091_s3 + $0x38] sm:$0xff]  ;;  %v72_v58 = vld [vmem:[#allocation2 + $0x68] sm:$0xff]  ;;  %v2719_v62 = vpack.c.bf16 %v520_v52, %v519_v51  ;;  %v127_v3 = vpack.c.bf16 %v69_v55, %v67_v54 }
  0x38   :  { %v74_v59 = vld [vmem:[#allocation2 + $0x78] sm:$0xff]  ;;  %v99_v60 = vld [vmem:[#allocation2 + $0x140] sm:$0xff]  ;;  %v101_v61 = vld [vmem:[#allocation2 + $0x150] sm:$0xff]  ;;  %v2723_v4 = vpack.c.bf16 %v522_v57, %v521_v56 }
  0x39   :  { %v104_v63 = vld [vmem:[#allocation2 + $0x168] sm:$0xff]  ;;  %v106_v0 = vld [vmem:[#allocation2 + $0x178] sm:$0xff]  ;;  %v523_v1 = vld [vmem:[%s4091_s3 + $0x40] sm:$0xff]  ;;  %v130_v5 = vpack.c.bf16 %v74_v59, %v72_v58  ;;  %v143_v6 = vpack.c.bf16 %v101_v61, %v99_v60 }
  0x3a   :  { %2408 = vmatpush3.bf16.msra.mxu0 %v2779_v9  ;;  %2755 = vmatpush3.bf16.msra.mxu1 %v2779_v9  ;;  %v524_v2 = vld [vmem:[%s4091_s3 + $0x48] sm:$0xff]  ;;  %v146_v7 = vpack.c.bf16 %v106_v0, %v104_v63  ;;  %v71_v8 = vld [vmem:[#allocation2 + $0x60] sm:$0xff]  ;;  %v73_v9 = vld [vmem:[#allocation2 + $0x70] sm:$0xff] }
  0x3b   :  { %2409 = vmatprep.subr.bf16.mxu0 %v2780_v10  ;;  %2748 = vmatprep.subr.bf16.mxu1 %v2780_v10  ;;  %v525_v10 = vld [vmem:[%s4091_s3 + $0x50] sm:$0xff]  ;;  %v526_v11 = vld [vmem:[%s4091_s3 + $0x58] sm:$0xff]  ;;  %v76_v12 = vld [vmem:[#allocation2 + $0x88] sm:$0xff]  ;;  %v129_v19 = vpack.c.bf16 %v73_v9, %v71_v8 }
  0x3c   :  { %v78_v13 = vld [vmem:[#allocation2 + $0x98] sm:$0xff]  ;;  %v2731_v20 = vpack.c.bf16 %v526_v11, %v525_v10  ;;  %v527_v23 = vld [vmem:[%s4091_s3 + $0x60] sm:$0xff]  ;;  %v528_v24 = vld [vmem:[%s4091_s3 + $0x68] sm:$0xff] }
  0x3d   :  { %v132_v21 = vpack.c.bf16 %v78_v13, %v76_v12  ;;  %v2735_v26 = vpack.c.bf16 %v528_v24, %v527_v23  ;;  %v75_v27 = vld [vmem:[#allocation2 + $0x80] sm:$0xff]  ;;  %v77_v28 = vld [vmem:[#allocation2 + $0x90] sm:$0xff]  ;;  %v80_v29 = vld [vmem:[#allocation2 + $0xa8] sm:$0xff] }
  0x3e   :  { %2410 = vmatpush3.bf16.msra.mxu0 %v2781_v14  ;;  %2756 = vmatpush3.bf16.msra.mxu1 %v2781_v14  ;;  %v103_v14 = vld [vmem:[#allocation2 + $0x160] sm:$0xff]  ;;  %v114_v34 = vld [vmem:[#allocation2 + $0x1b8] sm:$0xff]  ;;  %v131_v35 = vpack.c.bf16 %v77_v28, %v75_v27  ;;  %v81_v40 = vld [vmem:[#allocation2 + $0xb0] sm:$0xff] }
  0x3f   :  { %2411 = vmatprep.subr.bf16.mxu0 %v2782_v15  ;;  %2749 = vmatprep.subr.bf16.mxu1 %v2782_v15  ;;  %v2727_v15 = vpack.c.bf16 %v524_v2, %v523_v1  ;;  %v79_v39 = vld [vmem:[#allocation2 + $0xa0] sm:$0xff]  ;;  %v84_v41 = vld [vmem:[#allocation2 + $0xc8] sm:$0xff]  ;;  %v86_v42 = vld [vmem:[#allocation2 + $0xd8] sm:$0xff] }
  0x40   :  { %v111_v43 = vld [vmem:[#allocation2 + $0x1a0] sm:$0xff]  ;;  %v118_v46 = vld [vmem:[#allocation2 + $0x1d8] sm:$0xff]  ;;  %v133_v47 = vpack.c.bf16 %v81_v40, %v79_v39  ;;  %v85_v52 = vld [vmem:[#allocation2 + $0xd0] sm:$0xff] }
  0x41   :  { %v83_v51 = vld [vmem:[#allocation2 + $0xc0] sm:$0xff]  ;;  %v90_v54 = vld [vmem:[#allocation2 + $0xf8] sm:$0xff]  ;;  %v117_v56 = vld [vmem:[#allocation2 + $0x1d0] sm:$0xff] }
  0x42   :  { %2412 = vmatpush3.bf16.msra.mxu0 %v2783_v16  ;;  %2757 = vmatpush3.bf16.msra.mxu1 %v2783_v16  ;;  %v105_v16 = vld [vmem:[#allocation2 + $0x170] sm:$0xff]  ;;  %v115_v55 = vld [vmem:[#allocation2 + $0x1c0] sm:$0xff]  ;;  %v120_v57 = vld [vmem:[#allocation2 + $0x1e8] sm:$0xff]  ;;  %v135_v59 = vpack.c.bf16 %v85_v52, %v83_v51 }
  0x43   :  { %2413 = vmatprep.subr.bf16.mxu0 %v2784_v17  ;;  %2750 = vmatprep.subr.bf16.mxu1 %v2784_v17  ;;  %v108_v17 = vld [vmem:[#allocation2 + $0x188] sm:$0xff]  ;;  %v145_v22 = vpack.c.bf16 %v105_v16, %v103_v14  ;;  %v122_v58 = vld [vmem:[#allocation2 + $0x1f8] sm:$0xff]  ;;  %v151_v61 = vpack.c.bf16 %v117_v56, %v115_v55  ;;  %v87_v63 = vld [vmem:[#allocation2 + $0xe0] sm:$0xff] }
  0x44   :  { %v89_v0 = vld [vmem:[#allocation2 + $0xf0] sm:$0xff]  ;;  %v119_v1 = vld [vmem:[#allocation2 + $0x1e0] sm:$0xff] }
  0x45   :  { %v121_v2 = vld [vmem:[#allocation2 + $0x1f0] sm:$0xff]  ;;  %v3419_v9 = vld [vmem:[%s4094_s6] ss:$0 sm:$0xff] }
  0x46   :  { %2414 = vmatpush3.bf16.msra.mxu0 %v2785_v18  ;;  %2758 = vmatpush3.bf16.msra.mxu1 %v2785_v18  ;;  %v110_v18 = vld [vmem:[#allocation2 + $0x198] sm:$0xff] }
  0x47   :  { %2712 = vmatprep.subr.bf16.mxu1 %v2711_v45  ;;  %v148_v25 = vpack.c.bf16 %v110_v18, %v108_v17 }
  0x49   :  { %355 = vmatmul.mubr.bf16.vlgmr.msra.gmra.mrb[0].mxu0 %v123_v30  ;;  %419 = vmatmul.mubr.bf16.vlgmr.msra.gmra.mrb[0].mxu1 %v139_v32  ;;  %v82_v30 = vld [vmem:[#allocation2 + $0xb8] sm:$0xff]  ;;  %v109_v32 = vld [vmem:[#allocation2 + $0x190] sm:$0xff] }
  0x4a   :  { %362 = vmatprep.mubr.bf16.mxu0 %v126_v31  ;;  %426 = vmatprep.mubr.bf16.mxu1 %v142_v33  ;;  %v107_v31 = vld [vmem:[#allocation2 + $0x180] sm:$0xff]  ;;  %v112_v33 = vld [vmem:[#allocation2 + $0x1a8] sm:$0xff]  ;;  %v134_v36 = vpack.c.bf16 %v82_v30, %v80_v29 }
  0x4b   :  { %2714 = vmatpush3.bf16.msra.mxu1 %v2711_v45  ;;  %v147_v37 = vpack.c.bf16 %v109_v32, %v107_v31  ;;  %v150_v38 = vpack.c.bf16 %v114_v34, %v112_v33  ;;  %v116_v45 = vld [vmem:[#allocation2 + $0x1c8] sm:$0xff] }
  0x4c   :  { %2716 = vmatprep.subr.bf16.mxu1 %v2715_v50 }
  0x4f   :  { %2718 = vmatpush3.bf16.msra.mxu1 %v2715_v50  ;;  %v152_v50 = vpack.c.bf16 %v118_v46, %v116_v45 }
  0x50   :  { %2720 = vmatprep.subr.bf16.mxu1 %v2719_v62 }
  0x51   :  { %363 = vmatmul.mubr.bf16.gmra.mrb[4].mxu0 %v125_v44  ;;  %427 = vmatmul.mubr.bf16.gmra.mrb[4].mxu1 %v141_v49  ;;  %v113_v44 = vld [vmem:[#allocation2 + $0x1b0] sm:$0xff] }
  0x52   :  { %370 = vmatprep.mubr.bf16.mxu0 %v128_v48  ;;  %434 = vmatprep.mubr.bf16.mxu1 %v144_v53  ;;  %v136_v48 = vpack.c.bf16 %v86_v42, %v84_v41  ;;  %v149_v49 = vpack.c.bf16 %v113_v44, %v111_v43  ;;  %v88_v53 = vld [vmem:[#allocation2 + $0xe8] sm:$0xff] }
  0x53   :  { %2722 = vmatpush3.bf16.msra.mxu1 %v2719_v62  ;;  %v138_v60 = vpack.c.bf16 %v90_v54, %v88_v53  ;;  %v154_v62 = vpack.c.bf16 %v122_v58, %v120_v57 }
  0x54   :  { %2724 = vmatprep.subr.bf16.mxu1 %v2723_v4 }
  0x57   :  { %2726 = vmatpush3.bf16.msra.mxu1 %v2723_v4  ;;  %v153_v4 = vpack.c.bf16 %v121_v2, %v119_v1 }
  0x58   :  { %2728 = vmatprep.subr.bf16.mxu1 %v2727_v15 }
  0x59   :  { %371 = vmatmul.mubr.bf16.gmra.mrb[8].mxu0 %v127_v3  ;;  %435 = vmatmul.mubr.bf16.gmra.mrb[8].mxu1 %v143_v6  ;;  %v137_v3 = vpack.c.bf16 %v89_v0, %v87_v63  ;;  %v530_v6 = vld [vmem:[%s4091_s3 + $0x78] sm:$0xff] }
  0x5a   :  { %378 = vmatprep.mubr.bf16.mxu0 %v130_v5  ;;  %442 = vmatprep.mubr.bf16.mxu1 %v146_v7  ;;  %v529_v5 = vld [vmem:[%s4091_s3 + $0x70] sm:$0xff] }
  0x5b   :  { %2730 = vmatpush3.bf16.msra.mxu1 %v2727_v15  ;;  %v2739_v7 = vpack.c.bf16 %v530_v6, %v529_v5 }
  0x5c   :  { %2732 = vmatprep.subr.bf16.mxu1 %v2731_v20 }
  0x5f   :  { %2734 = vmatpush3.bf16.msra.mxu1 %v2731_v20 }
  0x60   :  { %2736 = vmatprep.subr.bf16.mxu1 %v2735_v26 }
  0x61   :  { %379 = vmatmul.mubr.bf16.gmra.mrb[12].mxu0 %v129_v19  ;;  %443 = vmatmul.mubr.bf16.gmra.mrb[12].mxu1 %v145_v22 }
  0x62   :  { %386 = vmatprep.mubr.bf16.mxu0 %v132_v21  ;;  %450 = vmatprep.mubr.bf16.mxu1 %v148_v25 }
  0x63   :  { %2738 = vmatpush3.bf16.msra.mxu1 %v2735_v26 }
  0x64   :  { %2740 = vmatprep.subr.bf16.mxu1 %v2739_v7 }
  0x67   :  { %2742 = vmatpush3.bf16.msra.mxu1 %v2739_v7 }
  0x69   :  { %387 = vmatmul.mubr.bf16.gmra.mrb[16].mxu0 %v131_v35  ;;  %451 = vmatmul.mubr.bf16.gmra.mrb[16].mxu1 %v147_v37 }
  0x6a   :  { %394 = vmatprep.mubr.bf16.mxu0 %v134_v36  ;;  %458 = vmatprep.mubr.bf16.mxu1 %v150_v38 }
  0x71   :  { %395 = vmatmul.mubr.bf16.gmra.mrb[20].mxu0 %v133_v47  ;;  %459 = vmatmul.mubr.bf16.gmra.mrb[20].mxu1 %v149_v49 }
  0x72   :  { %402 = vmatprep.mubr.bf16.mxu0 %v136_v48  ;;  %466 = vmatprep.mubr.bf16.mxu1 %v152_v50 }
  0x79   :  { %403 = vmatmul.mubr.bf16.gmra.mrb[24].mxu0 %v135_v59  ;;  %467 = vmatmul.mubr.bf16.gmra.mrb[24].mxu1 %v151_v61 }
  0x7a   :  { %410 = vmatprep.mubr.bf16.mxu0 %v138_v60  ;;  %474 = vmatprep.mubr.bf16.mxu1 %v154_v62 }
  0x81   :  { %411 = vmatmul.mubr.bf16.gmra.mrb[28].mxu0 %v137_v3  ;;  %475 = vmatmul.mubr.bf16.gmra.mrb[28].mxu1 %v153_v4 }
 0x11c   :  { %v2415_v8 = vpop.f32.mrb[0].mxu0  ;;  %v2463_v11 = vpop.f32.mrb[0].mxu1 }
 0x11d   :  { %v2416_v10 = vpop.f32.mrb[1].mxu0  ;;  %v2464_v14 = vpop.f32.mrb[1].mxu1 }
 0x11e   :  { %v2417_v12 = vadd.f32 %v2416_v10, %v2415_v8  ;;  %v2418_v13 = vpop.f32.mrb[2].mxu0  ;;  %v3421_v16 = vadd.f32 %v2464_v14, %v2463_v11  ;;  %v2466_v17 = vpop.f32.mrb[2].mxu1 }
 0x11f   :  { %v2419_v15 = vpop.f32.mrb[3].mxu0  ;;  %v2467_v20 = vpop.f32.mrb[3].mxu1 }
 0x120   :  { %v357_v18 = vadd.f32 %v2417_v12, %v3419_v9  ;;  %v2420_v19 = vadd.f32 %v2419_v15, %v2418_v13  ;;  %v3424_v21 = vadd.f32 %v2467_v20, %v2466_v17 }
 0x122   :  { %v483_v22 = vmax.f32 %v357_v18, 0.0  ;;  %v360_v23 = vadd.f32 %v2420_v19, %v3419_v9 }
 0x124   :  { %v484_v24 = vmax.f32 %v360_v23, 0.0  ;;  %v2421_v25 = vpop.f32.mrb[4].mxu0  ;;  %2615 = vmatprep.mubr.f32.mxu1 %v483_v22  ;;  %v2469_v27 = vpop.f32.mrb[4].mxu1 }
 0x125   :  { %v2422_v26 = vpop.f32.mrb[5].mxu0  ;;  %v2470_v30 = vpop.f32.mrb[5].mxu1 }
 0x126   :  { %v2423_v28 = vadd.f32 %v2422_v26, %v2421_v25  ;;  %v2424_v29 = vpop.f32.mrb[6].mxu0  ;;  %2616 = vmatmul.mubr.f32.vlgmr.msra.gmra.mrb[32].mxu1 %v484_v24  ;;  %v3427_v32 = vadd.f32 %v2470_v30, %v2469_v27  ;;  %v2472_v33 = vpop.f32.mrb[6].mxu1 }
 0x127   :  { %v2425_v31 = vpop.f32.mrb[7].mxu0  ;;  %v2473_v36 = vpop.f32.mrb[7].mxu1 }
 0x128   :  { %v365_v34 = vadd.f32 %v2423_v28, %v3419_v9  ;;  %v2426_v35 = vadd.f32 %v2425_v31, %v2424_v29  ;;  %v2474_v37 = vadd.f32 %v2473_v36, %v2472_v33 }
 0x12a   :  { %v485_v38 = vmax.f32 %v365_v34, 0.0  ;;  %v368_v39 = vadd.f32 %v2426_v35, %v3419_v9  ;;  %v3432_v40 = vadd.f32 %v2474_v37, %v3419_v9 }
 0x12c   :  { %v486_v41 = vmax.f32 %v368_v39, 0.0  ;;  %v2427_v42 = vpop.f32.mrb[8].mxu0  ;;  %2618 = vmatprep.mubr.f32.mxu1 %v485_v38  ;;  %v2475_v44 = vpop.f32.mrb[8].mxu1 }
 0x12d   :  { %v2428_v43 = vpop.f32.mrb[9].mxu0  ;;  %v2476_v47 = vpop.f32.mrb[9].mxu1 }
 0x12e   :  { %v2429_v45 = vadd.f32 %v2428_v43, %v2427_v42  ;;  %v2430_v46 = vpop.f32.mrb[10].mxu0  ;;  %2619 = vmatmul.mubr.f32.gmra.mrb[34].mxu1 %v486_v41  ;;  %v2477_v49 = vadd.f32 %v2476_v47, %v2475_v44  ;;  %v2478_v50 = vpop.f32.mrb[10].mxu1 }
 0x12f   :  { %v2431_v48 = vpop.f32.mrb[11].mxu0  ;;  %v2479_v53 = vpop.f32.mrb[11].mxu1 }
 0x130   :  { %v373_v51 = vadd.f32 %v2429_v45, %v3419_v9  ;;  %v2432_v52 = vadd.f32 %v2431_v48, %v2430_v46  ;;  %v3436_v54 = vadd.f32 %v2477_v49, %v3419_v9  ;;  %v2480_v55 = vadd.f32 %v2479_v53, %v2478_v50 }
 0x132   :  { %v487_v56 = vmax.f32 %v373_v51, 0.0  ;;  %v376_v57 = vadd.f32 %v2432_v52, %v3419_v9  ;;  %v3440_v58 = vadd.f32 %v2480_v55, %v3419_v9 }
 0x134   :  { %v488_v59 = vmax.f32 %v376_v57, 0.0  ;;  %v2433_v60 = vpop.f32.mrb[12].mxu0  ;;  %2621 = vmatprep.mubr.f32.mxu1 %v487_v56  ;;  %v2481_v62 = vpop.f32.mrb[12].mxu1 }
 0x135   :  { %v2434_v61 = vpop.f32.mrb[13].mxu0  ;;  %v2482_v1 = vpop.f32.mrb[13].mxu1 }
 0x136   :  { %v2435_v63 = vadd.f32 %v2434_v61, %v2433_v60  ;;  %v2436_v0 = vpop.f32.mrb[14].mxu0  ;;  %2622 = vmatmul.mubr.f32.gmra.mrb[36].mxu1 %v488_v59  ;;  %v2483_v3 = vadd.f32 %v2482_v1, %v2481_v62  ;;  %v2484_v4 = vpop.f32.mrb[14].mxu1 }
 0x137   :  { %v2437_v2 = vpop.f32.mrb[15].mxu0  ;;  %v2485_v7 = vpop.f32.mrb[15].mxu1 }
 0x138   :  { %v381_v5 = vadd.f32 %v2435_v63, %v3419_v9  ;;  %v2438_v6 = vadd.f32 %v2437_v2, %v2436_v0  ;;  %v3444_v8 = vadd.f32 %v2483_v3, %v3419_v9  ;;  %v2486_v10 = vadd.f32 %v2485_v7, %v2484_v4 }
 0x13a   :  { %v489_v11 = vmax.f32 %v381_v5, 0.0  ;;  %v384_v12 = vadd.f32 %v2438_v6, %v3419_v9  ;;  %v3448_v13 = vadd.f32 %v2486_v10, %v3419_v9 }
 0x13c   :  { %v490_v14 = vmax.f32 %v384_v12, 0.0  ;;  %v2439_v15 = vpop.f32.mrb[16].mxu0  ;;  %2624 = vmatprep.mubr.f32.mxu1 %v489_v11  ;;  %v2487_v18 = vpop.f32.mrb[16].mxu1 }
 0x13d   :  { %v2440_v17 = vpop.f32.mrb[17].mxu0  ;;  %v2488_v22 = vpop.f32.mrb[17].mxu1 }
 0x13e   :  { %v2441_v19 = vadd.f32 %v2440_v17, %v2439_v15  ;;  %v2442_v20 = vpop.f32.mrb[18].mxu0  ;;  %2625 = vmatmul.mubr.f32.gmra.mrb[38].mxu1 %v490_v14  ;;  %v2489_v24 = vadd.f32 %v2488_v22, %v2487_v18  ;;  %v2490_v25 = vpop.f32.mrb[18].mxu1 }
 0x13f   :  { %v2443_v23 = vpop.f32.mrb[19].mxu0  ;;  %v2491_v28 = vpop.f32.mrb[19].mxu1 }
 0x140   :  { %v389_v26 = vadd.f32 %v2441_v19, %v3419_v9  ;;  %v2444_v27 = vadd.f32 %v2443_v23, %v2442_v20  ;;  %v3452_v29 = vadd.f32 %v2489_v24, %v3419_v9  ;;  %v2492_v30 = vadd.f32 %v2491_v28, %v2490_v25 }
 0x141   :  { %v421_v23 = vadd.f32 %v3421_v16, %v3419_v9 }
 0x142   :  { %v491_v31 = vmax.f32 %v389_v26, 0.0  ;;  %v392_v33 = vadd.f32 %v2444_v27, %v3419_v9  ;;  %v3456_v34 = vadd.f32 %v2492_v30, %v3419_v9 }
 0x144   :  { %v492_v35 = vmax.f32 %v392_v33, 0.0  ;;  %v2445_v36 = vpop.f32.mrb[20].mxu0  ;;  %2627 = vmatprep.mubr.f32.mxu1 %v491_v31  ;;  %v2493_v38 = vpop.f32.mrb[20].mxu1 }
 0x145   :  { %v2446_v37 = vpop.f32.mrb[21].mxu0  ;;  %v2494_v42 = vpop.f32.mrb[21].mxu1 }
 0x146   :  { %v2447_v39 = vadd.f32 %v2446_v37, %v2445_v36  ;;  %v2448_v41 = vpop.f32.mrb[22].mxu0  ;;  %2628 = vmatmul.mubr.f32.gmra.mrb[40].mxu1 %v492_v35  ;;  %v2495_v44 = vadd.f32 %v2494_v42, %v2493_v38  ;;  %v2496_v45 = vpop.f32.mrb[22].mxu1  ;;  %v424_v36 = vadd.f32 %v3424_v21, %v3419_v9  ;;  %v499_v37 = vmax.f32 %v421_v23, 0.0 }
 0x147   :  { %v2449_v43 = vpop.f32.mrb[23].mxu0  ;;  %v2497_v48 = vpop.f32.mrb[23].mxu1  ;;  %v429_v38 = vadd.f32 %v3427_v32, %v3419_v9  ;;  %v504_v21 = vmax.f32 %v3440_v58, 0.0  ;;  %v507_v32 = vmax.f32 %v3452_v29, 0.0  ;;  %v2786_v29 = vld [vmem:[%s4092_s4] sm:$0xff]  }
 0x148   :  { %v397_v46 = vadd.f32 %v2447_v39, %v3419_v9  ;;  %v2450_v47 = vadd.f32 %v2449_v43, %v2448_v41  ;;  %v3460_v49 = vadd.f32 %v2495_v44, %v3419_v9  ;;  %v2498_v50 = vadd.f32 %v2497_v48, %v2496_v45  ;;  %2663 = vmatprep.subr.bf16.mxu1 %v2786_v29  ;;  %v2788_v48 = vld [vmem:[%s4092_s4 + $0x10] sm:$0xff]  }
 0x149   :  { %v500_v41 = vmax.f32 %v424_v36, 0.0  ;;  %v501_v42 = vmax.f32 %v429_v38, 0.0  ;;  %v502_v43 = vmax.f32 %v3432_v40, 0.0  ;;  %v503_v44 = vmax.f32 %v3436_v54, 0.0  ;;  %2664 = vmatpush3.bf16.msra.mxu1 %v2786_v29 }
 0x14a   :  { %v493_v51 = vmax.f32 %v397_v46, 0.0  ;;  %v400_v52 = vadd.f32 %v2450_v47, %v3419_v9  ;;  %v3464_v53 = vadd.f32 %v2498_v50, %v3419_v9  ;;  %v505_v45 = vmax.f32 %v3444_v8, 0.0  ;;  %v3504_v50 = vld [vmem:[%s4094_s6 + $0x1] ss:$0 sm:$0xff] }
 0x14b   :  { %v508_v46 = vmax.f32 %v3456_v34, 0.0  ;;  %v509_v40 = vmax.f32 %v3460_v49, 0.0  ;;  %v2787_v34 = vld [vmem:[%s4092_s4 + $0x8] sm:$0xff]   ;;  %v2789_v49 = vld [vmem:[%s4092_s4 + $0x18] sm:$0xff]  }
 0x14c   :  { %v494_v55 = vmax.f32 %v400_v52, 0.0  ;;  %v2451_v56 = vpop.f32.mrb[24].mxu0  ;;  %2630 = vmatprep.mubr.f32.mxu1 %v493_v51  ;;  %v2499_v59 = vpop.f32.mrb[24].mxu1  ;;  %v510_v54 = vmax.f32 %v3464_v53, 0.0  ;;  %2665 = vmatprep.subr.bf16.mxu1 %v2787_v34  ;;  %v2790_v51 = vld [vmem:[%s4092_s4 + $0x20] sm:$0xff]  }
 0x14d   :  { %v2452_v57 = vpop.f32.mrb[25].mxu0  ;;  %v2500_v62 = vpop.f32.mrb[25].mxu1  ;;  %2666 = vmatpush3.bf16.msra.mxu1 %v2787_v34 }
 0x14e   :  { %v2453_v60 = vadd.f32 %v2452_v57, %v2451_v56  ;;  %v2454_v61 = vpop.f32.mrb[26].mxu0  ;;  %2631 = vmatmul.mubr.f32.gmra.mrb[42].mxu1 %v494_v55  ;;  %v2501_v0 = vadd.f32 %v2500_v62, %v2499_v59  ;;  %v2502_v1 = vpop.f32.mrb[26].mxu1  ;;  %2667 = vmatprep.subr.bf16.mxu1 %v2788_v48 }
 0x14f   :  { %v2455_v63 = vpop.f32.mrb[27].mxu0  ;;  %v2503_v4 = vpop.f32.mrb[27].mxu1 }
 0x150   :  { %v405_v2 = vadd.f32 %v2453_v60, %v3419_v9  ;;  %v2456_v3 = vadd.f32 %v2455_v63, %v2454_v61  ;;  %v469_v5 = vadd.f32 %v2501_v0, %v3419_v9  ;;  %v2504_v6 = vadd.f32 %v2503_v4, %v2502_v1  ;;  %v2791_v1 = vld [vmem:[%s4092_s4 + $0x28] sm:$0xff]  }
 0x151   :  { %2668 = vmatpush3.bf16.msra.mxu1 %v2788_v48 }
 0x152   :  { %v495_v7 = vmax.f32 %v405_v2, 0.0  ;;  %v408_v10 = vadd.f32 %v2456_v3, %v3419_v9  ;;  %v472_v11 = vadd.f32 %v2504_v6, %v3419_v9  ;;  %v511_v47 = vmax.f32 %v469_v5, 0.0  ;;  %2669 = vmatprep.subr.bf16.mxu1 %v2789_v49 }
 0x154   :  { %v496_v12 = vmax.f32 %v408_v10, 0.0  ;;  %v2457_v14 = vpop.f32.mrb[28].mxu0  ;;  %2633 = vmatprep.mubr.f32.mxu1 %v495_v7  ;;  %v2505_v17 = vpop.f32.mrb[28].mxu1  ;;  %v512_v58 = vmax.f32 %v472_v11, 0.0  ;;  %v2792_v7 = vld [vmem:[%s4092_s4 + $0x30] sm:$0xff]  }
 0x155   :  { %v2458_v15 = vpop.f32.mrb[29].mxu0  ;;  %v2506_v20 = vpop.f32.mrb[29].mxu1  ;;  %2670 = vmatpush3.bf16.msra.mxu1 %v2789_v49 }
 0x156   :  { %v2459_v18 = vadd.f32 %v2458_v15, %v2457_v14  ;;  %v2460_v19 = vpop.f32.mrb[30].mxu0  ;;  %2634 = vmatmul.mubr.f32.gmra.mrb[44].mxu1 %v496_v12  ;;  %v2507_v24 = vadd.f32 %v2506_v20, %v2505_v17  ;;  %v2508_v25 = vpop.f32.mrb[30].mxu1  ;;  %2671 = vmatprep.subr.bf16.mxu1 %v2790_v51 }
 0x157   :  { %v2461_v22 = vpop.f32.mrb[31].mxu0  ;;  %v2509_v28 = vpop.f32.mrb[31].mxu1 }
 0x158   :  { %v413_v26 = vadd.f32 %v2459_v18, %v3419_v9  ;;  %v2462_v27 = vadd.f32 %v2461_v22, %v2460_v19  ;;  %v477_v30 = vadd.f32 %v2507_v24, %v3419_v9  ;;  %v2510_v31 = vadd.f32 %v2509_v28, %v2508_v25 }
 0x159   :  { %2672 = vmatpush3.bf16.msra.mxu1 %v2790_v51 }
 0x15a   :  { %v497_v33 = vmax.f32 %v413_v26, 0.0  ;;  %v416_v35 = vadd.f32 %v2462_v27, %v3419_v9  ;;  %v480_v16 = vadd.f32 %v2510_v31, %v3419_v9  ;;  %v506_v9 = vmax.f32 %v3448_v13, 0.0  ;;  %2673 = vmatprep.subr.bf16.mxu1 %v2791_v1  ;;  %v2793_v27 = vld [vmem:[%s4092_s4 + $0x38] sm:$0xff]  }
 0x15b   :  { %v513_v8 = vmax.f32 %v477_v30, 0.0 }
 0x15c   :  { %v498_v39 = vmax.f32 %v416_v35, 0.0  ;;  %2636 = vmatprep.mubr.f32.mxu1 %v497_v33  ;;  %v514_v13 = vmax.f32 %v480_v16, 0.0 }
 0x15d   :  { %2674 = vmatpush3.bf16.msra.mxu1 %v2791_v1 }
 0x15e   :  { %2637 = vmatmul.mubr.f32.gmra.mrb[46].mxu1 %v498_v39  ;;  %2675 = vmatprep.subr.bf16.mxu1 %v2792_v7 }
 0x15f   :  { %2639 = vmatprep.mubr.f32.mxu1 %v499_v37 }
 0x161   :  { %2676 = vmatpush3.bf16.msra.mxu1 %v2792_v7 }
 0x162   :  { %2640 = vmatmul.mubr.f32.gmra.mrb[48].mxu1 %v500_v41  ;;  %2677 = vmatprep.subr.bf16.mxu1 %v2793_v27 }
 0x163   :  { %2642 = vmatprep.mubr.f32.mxu1 %v501_v42 }
 0x165   :  { %2678 = vmatpush3.bf16.msra.mxu1 %v2793_v27 }
 0x166   :  { %2643 = vmatmul.mubr.f32.gmra.mrb[50].mxu1 %v502_v43 }
 0x167   :  { %2645 = vmatprep.mubr.f32.mxu1 %v503_v44 }
 0x16a   :  { %2646 = vmatmul.mubr.f32.gmra.mrb[52].mxu1 %v504_v21 }
 0x16b   :  { %2648 = vmatprep.mubr.f32.mxu1 %v505_v45 }
 0x16e   :  { %2649 = vmatmul.mubr.f32.gmra.mrb[54].mxu1 %v506_v9 }
 0x16f   :  { %2651 = vmatprep.mubr.f32.mxu1 %v507_v32 }
 0x172   :  { %2652 = vmatmul.mubr.f32.gmra.mrb[56].mxu1 %v508_v46 }
 0x173   :  { %2654 = vmatprep.mubr.f32.mxu1 %v509_v40 }
 0x176   :  { %2655 = vmatmul.mubr.f32.gmra.mrb[58].mxu1 %v510_v54 }
 0x177   :  { %2657 = vmatprep.mubr.f32.mxu1 %v511_v47 }
 0x17a   :  { %2658 = vmatmul.mubr.f32.gmra.mrb[60].mxu1 %v512_v58 }
 0x17b   :  { %2660 = vmatprep.mubr.f32.mxu1 %v513_v8 }
 0x17e   :  { %2661 = vmatmul.mubr.f32.gmra.mrb[62].mxu1 %v514_v13 }
 0x1f9   :  { %v2617_v52 = vpop.f32.mrb[32].mxu1 }
 0x1fa   :  { %v3510_v53 = vadd.f32 %v2617_v52, %v3504_v50  ;;  %v604_v55 = vpop.f32.mrb[33].mxu1 }
 0x1fb   :  { %v3513_v56 = vadd.f32 %v3504_v50, %v604_v55 }
 0x1fc   :  { %v764_v57 = vmul.f32 0.5, %v3510_v53  ;;  %1085 = vrot.lane.b32.xlu1 %v3510_v53, %s3240_s25 }
 0x1fd   :  { %v763_v59 = vmul.f32 0.5, %v3513_v56  ;;  %1083 = vrot.lane.b32.xlu0 %v3513_v56, %s3240_s25 }
 0x1fe   :  { %v797_v60 = vmul.f32 1.442695, %v764_v57 }
 0x1ff   :  { %v795_v61 = vmul.f32 1.442695, %v763_v59 }
 0x200   :  { %2818 = vpow2.f32 %v797_v60 }
 0x201   :  { %v2620_v62 = vpop.f32.mrb[34].mxu1  ;;  %2820 = vpow2.f32 %v795_v61 }
 0x202   :  { %v3522_v63 = vadd.f32 %v2620_v62, %v3504_v50  ;;  %v614_v0 = vpop.f32.mrb[35].mxu1 }
 0x203   :  { %v3528_v2 = vadd.f32 %v3504_v50, %v614_v0 }
 0x204   :  { %v766_v3 = vmul.f32 0.5, %v3522_v63 }
 0x205   :  { %v765_v4 = vmul.f32 0.5, %v3528_v2 }
 0x206   :  { %v801_v5 = vmul.f32 1.442695, %v766_v3 }
 0x207   :  { %v799_v6 = vmul.f32 1.442695, %v765_v4 }
 0x208   :  { %2822 = vpow2.f32 %v801_v5 }
 0x209   :  { %v2623_v10 = vpop.f32.mrb[36].mxu1  ;;  %2824 = vpow2.f32 %v799_v6 }
 0x20a   :  { %v2819_v11 = vpop.eup %2818  ;;  %v624_v12 = vpop.f32.mrb[37].mxu1  ;;  %v3540_v15 = vadd.f32 %v2623_v10, %v3504_v50 }
 0x20b   :  { %v3536_v14 = vadd.f32 %v3504_v50, %v624_v12  ;;  %893 = vrot.lane.b32.xlu0 %v2819_v11, %s3241_s9  ;;  %v2821_v18 = vpop.eup %2820 }
 0x20c   :  { %v768_v20 = vmul.f32 0.5, %v3540_v15 }
 0x20d   :  { %v767_v17 = vmul.f32 0.5, %v3536_v14 }
 0x20e   :  { %v805_v28 = vmul.f32 1.442695, %v768_v20 }
 0x20f   :  { %v803_v19 = vmul.f32 1.442695, %v767_v17  ;;  %891 = vrot.lane.b32.xlu0 %v2821_v18, %s3241_s9 }
 0x211   :  { %2826 = vpow2.f32 %v803_v19  ;;  %v2626_v22 = vpop.f32.mrb[38].mxu1 }
 0x212   :  { %v2823_v23 = vpop.eup %2822  ;;  %v3546_v24 = vadd.f32 %v2626_v22, %v3504_v50  ;;  %v634_v25 = vpop.f32.mrb[39].mxu1  ;;  %2828 = vpow2.f32 %v805_v28 }
 0x213   :  { %v3549_v26 = vadd.f32 %v3504_v50, %v634_v25  ;;  %897 = vrot.lane.b32.xlu1 %v2823_v23, %s3241_s9  ;;  %1087 = vrot.lane.b32.xlu0 %v3528_v2, %s3240_s25  ;;  %v2825_v33 = vpop.eup %2824 }
 0x214   :  { %v770_v30 = vmul.f32 0.5, %v3546_v24 }
 0x215   :  { %v769_v31 = vmul.f32 0.5, %v3549_v26 }
 0x216   :  { %v809_v36 = vmul.f32 1.442695, %v770_v30 }
 0x217   :  { %v807_v35 = vmul.f32 1.442695, %v769_v31  ;;  %895 = vrot.lane.b32.xlu1 %v2825_v33, %s3241_s9  ;;  %1091 = vrot.lane.b32.xlu0 %v3536_v14, %s3240_s25 }
 0x219   :  { %2830 = vpow2.f32 %v807_v35  ;;  %v2629_v37 = vpop.f32.mrb[40].mxu1 }
 0x21a   :  { %v644_v38 = vpop.f32.mrb[41].mxu1  ;;  %2832 = vpow2.f32 %v809_v36  ;;  %v3568_v41 = vadd.f32 %v2629_v37, %v3504_v50 }
 0x21b   :  { %v2827_v16 = vpop.eup %2826  ;;  %v3563_v39 = vadd.f32 %v3504_v50, %v644_v38  ;;  %1089 = vrot.lane.b32.xlu1 %v3522_v63, %s3240_s25 }
 0x21c   :  { %899 = vrot.lane.b32.xlu0 %v2827_v16, %s3241_s9  ;;  %v772_v43 = vmul.f32 0.5, %v3568_v41  ;;  %v2829_v45 = vpop.eup %2828 }
 0x21d   :  { %v771_v42 = vmul.f32 0.5, %v3563_v39 }
 0x21e   :  { %v813_v54 = vmul.f32 1.442695, %v772_v43 }
 0x21f   :  { %1093 = vrot.lane.b32.xlu1 %v3540_v15, %s3240_s25  ;;  %v811_v44 = vmul.f32 1.442695, %v771_v42 }
 0x221   :  { %v2632_v21 = vpop.f32.mrb[42].mxu1  ;;  %2834 = vpow2.f32 %v811_v44 }
 0x222   :  { %v3576_v9 = vadd.f32 %v2632_v21, %v3504_v50  ;;  %v654_v32 = vpop.f32.mrb[43].mxu1  ;;  %2836 = vpow2.f32 %v813_v54 }
 0x223   :  { %v2831_v46 = vpop.eup %2830  ;;  %v3579_v40 = vadd.f32 %v3504_v50, %v654_v32  ;;  %901 = vrot.lane.b32.xlu1 %v2829_v45, %s3241_s9 }
 0x224   :  { %v774_v47 = vmul.f32 0.5, %v3576_v9  ;;  %903 = vrot.lane.b32.xlu0 %v2831_v46, %s3241_s9  ;;  %v2833_v8 = vpop.eup %2832 }
 0x225   :  { %v773_v58 = vmul.f32 0.5, %v3579_v40 }
 0x226   :  { %v817_v29 = vmul.f32 1.442695, %v774_v47 }
 0x227   :  { %v815_v13 = vmul.f32 1.442695, %v773_v58  ;;  %905 = vrot.lane.b32.xlu1 %v2833_v8, %s3241_s9 }
 0x228   :  { %1095 = vrot.lane.b32.xlu0 %v3549_v26, %s3240_s25 }
 0x229   :  { %2838 = vpow2.f32 %v815_v13  ;;  %v2635_v34 = vpop.f32.mrb[44].mxu1 }
 0x22a   :  { %v664_v48 = vpop.f32.mrb[45].mxu1  ;;  %2840 = vpow2.f32 %v817_v29  ;;  %v3594_v51 = vadd.f32 %v2635_v34, %v3504_v50 }
 0x22b   :  { %v3589_v49 = vadd.f32 %v3504_v50, %v664_v48  ;;  %1097 = vrot.lane.b32.xlu1 %v3546_v24, %s3240_s25  ;;  %v2835_v55 = vpop.eup %2834 }
 0x22c   :  { %1099 = vrot.lane.b32.xlu0 %v3563_v39, %s3240_s25  ;;  %v776_v57 = vmul.f32 0.5, %v3594_v51  ;;  %v2837_v61 = vpop.eup %2836 }
 0x22d   :  { %v775_v52 = vmul.f32 0.5, %v3589_v49 }
 0x22e   :  { %v821_v4 = vmul.f32 1.442695, %v776_v57 }
 0x22f   :  { %1101 = vrot.lane.b32.xlu1 %v3568_v41, %s3240_s25  ;;  %v819_v59 = vmul.f32 1.442695, %v775_v52 }
 0x230   :  { %907 = vrot.lane.b32.xlu0 %v2835_v55, %s3241_s9 }
 0x231   :  { %v2638_v60 = vpop.f32.mrb[46].mxu1  ;;  %2842 = vpow2.f32 %v819_v59 }
 0x232   :  { %v3604_v62 = vadd.f32 %v2638_v60, %v3504_v50  ;;  %v674_v0 = vpop.f32.mrb[47].mxu1  ;;  %2844 = vpow2.f32 %v821_v4 }
 0x233   :  { %v2839_v1 = vpop.eup %2838  ;;  %v3607_v3 = vadd.f32 %v3504_v50, %v674_v0  ;;  %909 = vrot.lane.b32.xlu1 %v2837_v61, %s3241_s9 }
 0x234   :  { %v778_v5 = vmul.f32 0.5, %v3604_v62  ;;  %911 = vrot.lane.b32.xlu0 %v2839_v1, %s3241_s9  ;;  %v2841_v10 = vpop.eup %2840 }
 0x235   :  { %v777_v6 = vmul.f32 0.5, %v3607_v3  ;;  %v2641_v7 = vpop.f32.mrb[48].mxu1 }
 0x236   :  { %v684_v11 = vpop.f32.mrb[49].mxu1  ;;  %v825_v17 = vmul.f32 1.442695, %v778_v5  ;;  %v3625_v23 = vadd.f32 %v2641_v7, %v3504_v50 }
 0x237   :  { %v823_v12 = vmul.f32 1.442695, %v777_v6  ;;  %913 = vrot.lane.b32.xlu1 %v2841_v10, %s3241_s9  ;;  %v3617_v18 = vadd.f32 %v3504_v50, %v684_v11 }
 0x238   :  { %1103 = vrot.lane.b32.xlu0 %v3579_v40, %s3240_s25  ;;  %v780_v33 = vmul.f32 0.5, %v3625_v23 }
 0x239   :  { %2846 = vpow2.f32 %v823_v12  ;;  %v2644_v19 = vpop.f32.mrb[50].mxu1  ;;  %v779_v25 = vmul.f32 0.5, %v3617_v18 }
 0x23a   :  { %v694_v20 = vpop.f32.mrb[51].mxu1  ;;  %2848 = vpow2.f32 %v825_v17  ;;  %v3635_v35 = vadd.f32 %v2644_v19, %v3504_v50  ;;  %v829_v44 = vmul.f32 1.442695, %v780_v33 }
 0x23b   :  { %1105 = vrot.lane.b32.xlu1 %v3576_v9, %s3240_s25  ;;  %v3622_v22 = vadd.f32 %v3504_v50, %v694_v20  ;;  %v2843_v30 = vpop.eup %2842  ;;  %v827_v36 = vmul.f32 1.442695, %v779_v25 }
 0x23c   :  { %1107 = vrot.lane.b32.xlu0 %v3589_v49, %s3240_s25  ;;  %v2845_v38 = vpop.eup %2844  ;;  %v782_v21 = vmul.f32 0.5, %v3635_v35 }
 0x23d   :  { %v2647_v27 = vpop.f32.mrb[52].mxu1  ;;  %v781_v31 = vmul.f32 0.5, %v3622_v22  ;;  %2850 = vpow2.f32 %v827_v36 }
 0x23e   :  { %v704_v28 = vpop.f32.mrb[53].mxu1  ;;  %v833_v54 = vmul.f32 1.442695, %v782_v21  ;;  %v3653_v29 = vadd.f32 %v2647_v27, %v3504_v50 }
 0x23f   :  { %1109 = vrot.lane.b32.xlu1 %v3594_v51, %s3240_s25  ;;  %v831_v43 = vmul.f32 1.442695, %v781_v31  ;;  %v3645_v47 = vadd.f32 %v3504_v50, %v704_v28 }
 0x240   :  { %915 = vrot.lane.b32.xlu0 %v2843_v30, %s3241_s9  ;;  %v784_v59 = vmul.f32 0.5, %v3653_v29 }
 0x241   :  { %v2650_v37 = vpop.f32.mrb[54].mxu1  ;;  %2852 = vpow2.f32 %v831_v43  ;;  %v783_v34 = vmul.f32 0.5, %v3645_v47 }
 0x242   :  { %v714_v16 = vpop.f32.mrb[55].mxu1  ;;  %2854 = vpow2.f32 %v829_v44  ;;  %v3663_v60 = vadd.f32 %v2650_v37, %v3504_v50  ;;  %v837_v7 = vmul.f32 1.442695, %v784_v59 }
 0x243   :  { %v2847_v42 = vpop.eup %2846  ;;  %917 = vrot.lane.b32.xlu1 %v2845_v38, %s3241_s9  ;;  %v3650_v13 = vadd.f32 %v3504_v50, %v714_v16  ;;  %2856 = vpow2.f32 %v833_v54  ;;  %v835_v0 = vmul.f32 1.442695, %v783_v34 }
 0x244   :  { %919 = vrot.lane.b32.xlu0 %v2847_v42, %s3241_s9  ;;  %v2849_v32 = vpop.eup %2848  ;;  %v786_v10 = vmul.f32 0.5, %v3663_v60 }
 0x245   :  { %v2653_v45 = vpop.f32.mrb[56].mxu1  ;;  %v785_v57 = vmul.f32 0.5, %v3650_v13  ;;  %2858 = vpow2.f32 %v835_v0 }
 0x246   :  { %v724_v46 = vpop.f32.mrb[57].mxu1  ;;  %v841_v12 = vmul.f32 1.442695, %v786_v10  ;;  %v3681_v20 = vadd.f32 %v2653_v45, %v3504_v50 }
 0x247   :  { %921 = vrot.lane.b32.xlu1 %v2849_v32, %s3241_s9  ;;  %v2851_v55 = vpop.eup %2850  ;;  %v839_v6 = vmul.f32 1.442695, %v785_v57  ;;  %v3673_v17 = vadd.f32 %v3504_v50, %v724_v46 }
 0x248   :  { %1111 = vrot.lane.b32.xlu0 %v3607_v3, %s3240_s25  ;;  %v788_v30 = vmul.f32 0.5, %v3681_v20 }
 0x249   :  { %v2656_v58 = vpop.f32.mrb[58].mxu1  ;;  %2860 = vpow2.f32 %v839_v6  ;;  %v787_v25 = vmul.f32 0.5, %v3673_v17 }
 0x24a   :  { %v734_v8 = vpop.f32.mrb[59].mxu1  ;;  %2862 = vpow2.f32 %v837_v7  ;;  %v3691_v31 = vadd.f32 %v2656_v58, %v3504_v50  ;;  %v845_v16 = vmul.f32 1.442695, %v788_v30 }
 0x24b   :  { %1113 = vrot.lane.b32.xlu1 %v3604_v62, %s3240_s25  ;;  %v2853_v61 = vpop.eup %2852  ;;  %v3678_v19 = vadd.f32 %v3504_v50, %v734_v8  ;;  %2864 = vpow2.f32 %v841_v12  ;;  %v843_v36 = vmul.f32 1.442695, %v787_v25 }
 0x24c   :  { %1115 = vrot.lane.b32.xlu0 %v3617_v18, %s3240_s25  ;;  %v2855_v4 = vpop.eup %2854  ;;  %v790_v42 = vmul.f32 0.5, %v3691_v31 }
 0x24d   :  { %v2659_v48 = vpop.f32.mrb[60].mxu1  ;;  %v2857_v11 = vpop.eup %2856  ;;  %v789_v28 = vmul.f32 0.5, %v3678_v19  ;;  %2866 = vpow2.f32 %v843_v36 }
 0x24e   :  { %v744_v52 = vpop.f32.mrb[61].mxu1  ;;  %v849_v44 = vmul.f32 1.442695, %v790_v42  ;;  %v3709_v32 = vadd.f32 %v2659_v48, %v3504_v50 }
 0x24f   :  { %1117 = vrot.lane.b32.xlu1 %v3625_v23, %s3240_s25  ;;  %v2859_v27 = vpop.eup %2858  ;;  %v847_v38 = vmul.f32 1.442695, %v789_v28  ;;  %v3701_v21 = vadd.f32 %v3504_v50, %v744_v52 }
 0x250   :  { %923 = vrot.lane.b32.xlu0 %v2851_v55, %s3241_s9  ;;  %v792_v52 = vmul.f32 0.5, %v3709_v32 }
 0x251   :  { %v2662_v1 = vpop.f32.mrb[62].mxu1  ;;  %2868 = vpow2.f32 %v847_v38  ;;  %v791_v46 = vmul.f32 0.5, %v3701_v21 }
 0x252   :  { %v754_v5 = vpop.f32.mrb[63].mxu1  ;;  %2870 = vpow2.f32 %v845_v16  ;;  %v3721_v48 = vadd.f32 %v2662_v1, %v3504_v50  ;;  %v853_v0 = vmul.f32 1.442695, %v792_v52  ;;  %v156_v1 = vld [vmem:[%s4089_s1 + $0x8] sm:$0xff]  ;;  %v157_v16 = vld [vmem:[%s4089_s1 + $0x10] sm:$0xff] }
 0x253   :  { %925 = vrot.lane.b32.xlu1 %v2855_v4, %s3241_s9  ;;  %v2861_v33 = vpop.eup %2860  ;;  %v3706_v45 = vadd.f32 %v3504_v50, %v754_v5  ;;  %2872 = vpow2.f32 %v849_v44  ;;  %v851_v57 = vmul.f32 1.442695, %v791_v46  ;;  %v2794_v44 = vld [vmem:[#allocation5] ss:$8 sps:$4 sm:$0xff]   ;;  %v2796_v46 = vld [vmem:[#allocation5 + $0x4] ss:$8 sps:$4 sm:$0xff]  }
 0x254   :  { %927 = vrot.lane.b32.xlu0 %v2853_v61, %s3241_s9  ;;  %v2863_v37 = vpop.eup %2862  ;;  %v794_v4 = vmul.f32 0.5, %v3721_v48  ;;  %1681 = vmatprep.subr.bf16.mxu0 %v2796_v46  ;;  %v2797_v52 = vld [vmem:[#allocation5 + $0x10] ss:$8 sps:$4 sm:$0xff]  }
 0x255   :  { %v2865_v43 = vpop.eup %2864  ;;  %v793_v34 = vmul.f32 0.5, %v3706_v45  ;;  %2874 = vpow2.f32 %v851_v57  ;;  %1682 = vmatpush1.bf16.msra.mxu0 %v2794_v44 }
 0x256   :  { %v857_v50 = vmul.f32 1.442695, %v794_v4 }
 0x257   :  { %929 = vrot.lane.b32.xlu1 %v2857_v11, %s3241_s9  ;;  %v2867_v58 = vpop.eup %2866  ;;  %v855_v61 = vmul.f32 1.442695, %v793_v34  ;;  %v155_v11 = vld [vmem:[%s4089_s1] sm:$0xff] }
 0x258   :  { %1119 = vrot.lane.b32.xlu0 %v3622_v22, %s3240_s25  ;;  %v159_v34 = vld [vmem:[%s4089_s1 + $0x20] sm:$0xff] }
 0x259   :  { %2876 = vpow2.f32 %v855_v61 }
 0x25a   :  { %2878 = vpow2.f32 %v853_v0  ;;  %v2802_v0 = vld [vmem:[#allocation5 + $0x24] ss:$8 sps:$4 sm:$0xff]  }
 0x25b   :  { %1121 = vrot.lane.b32.xlu1 %v3635_v35, %s3240_s25  ;;  %v2869_v55 = vpop.eup %2868  ;;  %2880 = vpow2.f32 %v857_v50  ;;  %v2800_v50 = vld [vmem:[#allocation5 + $0x20] ss:$8 sps:$4 sm:$0xff]  }
 0x25c   :  { %1123 = vrot.lane.b32.xlu0 %v3645_v47, %s3240_s25  ;;  %v2871_v59 = vpop.eup %2870 }
 0x25d   :  { %v2873_v5 = vpop.eup %2872 }
 0x25f   :  { %1125 = vrot.lane.b32.xlu1 %v3653_v29, %s3240_s25  ;;  %v2875_v10 = vpop.eup %2874 }
 0x260   :  { %931 = vrot.lane.b32.xlu0 %v2859_v27, %s3241_s9 }
 0x263   :  { %933 = vrot.lane.b32.xlu1 %v2863_v37, %s3241_s9  ;;  %v2877_v25 = vpop.eup %2876 }
 0x264   :  { %935 = vrot.lane.b32.xlu0 %v2861_v33, %s3241_s9  ;;  %v2879_v28 = vpop.eup %2878 }
 0x265   :  { %v2881_v38 = vpop.eup %2880 }
 0x267   :  { %937 = vrot.lane.b32.xlu1 %v2865_v43, %s3241_s9 }
 0x268   :  { %1127 = vrot.lane.b32.xlu0 %v3650_v13, %s3240_s25 }
 0x26b   :  { %1129 = vrot.lane.b32.xlu1 %v3663_v60, %s3240_s25 }
 0x26c   :  { %1131 = vrot.lane.b32.xlu0 %v3673_v17, %s3240_s25 }
 0x26e   :  { %v1086_v54 = vpop.permute.xlu1 %1085 }
 0x26f   :  { %1181 = vst.msk [vmem:[#allocation8 + $0x8] sm:$0xff] %vm1179_vm0, %v1086_v54  ;;  %1133 = vrot.lane.b32.xlu1 %v3681_v20, %s3240_s25  ;;  %v1084_v8 = vpop.permute.xlu0 %1083 }
 0x270   :  { %1180 = vst.msk [vmem:[#allocation8] sm:$0xff] %vm1179_vm0, %v1084_v8  ;;  %939 = vrot.lane.b32.xlu0 %v2867_v58, %s3241_s9  ;;  %v2799_v58 = vld [vmem:[#allocation5 + $0x14] ss:$8 sps:$4 sm:$0xff]  }
 0x271   :  { %1683 = vmatprep.subr.bf16.mxu0 %v2799_v58  ;;  %v2814_v58 = vld [vmem:[#allocation5 + $0x64] ss:$8 sps:$4 sm:$0xff]  }
 0x272   :  { %1684 = vmatpush1.bf16.msra.mxu0 %v2797_v52 }
 0x273   :  { %941 = vrot.lane.b32.xlu1 %v2871_v59, %s3241_s9  ;;  %1685 = vmatprep.subr.bf16.mxu0 %v2802_v0  ;;  %v164_v0 = vld [vmem:[%s4089_s1 + $0x48] sm:$0xff] }
 0x274   :  { %943 = vrot.lane.b32.xlu0 %v2869_v55, %s3241_s9 }
 0x276   :  { %1686 = vmatpush1.bf16.msra.mxu0 %v2800_v50 }
 0x277   :  { %945 = vrot.lane.b32.xlu1 %v2873_v5, %s3241_s9 }
 0x278   :  { %1135 = vrot.lane.b32.xlu0 %v3678_v19, %s3240_s25 }
 0x27b   :  { %1137 = vrot.lane.b32.xlu1 %v3691_v31, %s3240_s25 }
 0x27c   :  { %1139 = vrot.lane.b32.xlu0 %v3701_v21, %s3240_s25 }
 0x27d   :  { %v894_v6 = vpop.permute.xlu0 %893 }
 0x27e   :  { %v988_v7 = vmul.f32 %v894_v6, %v156_v1  ;;  %v2805_v6 = vld [vmem:[#allocation5 + $0x34] ss:$8 sps:$4 sm:$0xff]  }
 0x27f   :  { %1141 = vrot.lane.b32.xlu1 %v3709_v32, %s3240_s25  ;;  %1687 = vmatprep.subr.bf16.mxu0 %v2805_v6 }
 0x280   :  { %v1020_v12 = vadd.f32 %v988_v7, %v3510_v53  ;;  %947 = vrot.lane.b32.xlu0 %v2875_v10, %s3241_s9  ;;  %v158_v53 = vld [vmem:[%s4089_s1 + $0x18] sm:$0xff]  ;;  %v160_v7 = vld [vmem:[%s4089_s1 + $0x28] sm:$0xff]  ;;  %v161_v10 = vld [vmem:[%s4089_s1 + $0x30] sm:$0xff] }
 0x281   :  { %v892_v27 = vpop.permute.xlu0 %891 }
 0x282   :  { %1214 = vst.msk [vmem:[#allocation8 + $0x8] sm:$0xff] %vm1212_vm1, %v1020_v12  ;;  %v987_v30 = vmul.f32 %v892_v27, %v155_v11  ;;  %v2803_v11 = vld [vmem:[#allocation5 + $0x30] ss:$8 sps:$4 sm:$0xff]  }
 0x283   :  { %949 = vrot.lane.b32.xlu1 %v2879_v28, %s3241_s9  ;;  %1688 = vmatpush1.bf16.msra.mxu0 %v2803_v11 }
 0x284   :  { %v1019_v33 = vadd.f32 %v987_v30, %v3513_v56  ;;  %951 = vrot.lane.b32.xlu0 %v2877_v25, %s3241_s9 }
 0x285   :  { %v898_v36 = vpop.permute.xlu1 %897  ;;  %v1088_v37 = vpop.permute.xlu0 %1087 }
 0x286   :  { %1213 = vst.msk [vmem:[#allocation8] sm:$0xff] %vm1212_vm1, %v1019_v33  ;;  %v990_v56 = vmul.f32 %v898_v36, %v158_v53  ;;  %v162_v36 = vld [vmem:[%s4089_s1 + $0x38] sm:$0xff]  ;;  %v2806_v53 = vld [vmem:[#allocation5 + $0x40] ss:$8 sps:$4 sm:$0xff]  }
 0x287   :  { %1182 = vst.msk [vmem:[#allocation8 + $0x10] sm:$0xff] %vm1179_vm0, %v1088_v37  ;;  %953 = vrot.lane.b32.xlu1 %v2881_v38, %s3241_s9 }
 0x288   :  { %1143 = vrot.lane.b32.xlu0 %v3706_v45, %s3240_s25  ;;  %v1022_v55 = vadd.f32 %v990_v56, %v3522_v63 }
 0x289   :  { %v896_v42 = vpop.permute.xlu1 %895  ;;  %v1092_v43 = vpop.permute.xlu0 %1091  ;;  %v1246_v61 = vld [vmem:[#allocation8 + $0x8] sm:$0xff] }
 0x28a   :  { %v989_v54 = vmul.f32 %v896_v42, %v157_v16  ;;  %1184 = vst.msk [vmem:[#allocation8 + $0x20] sm:$0xff] %vm1179_vm0, %v1092_v43  ;;  %v2811_v42 = vld [vmem:[#allocation5 + $0x54] ss:$8 sps:$4 sm:$0xff]  }
 0x28b   :  { %1145 = vrot.lane.b32.xlu1 %v3721_v48, %s3240_s25 }
 0x28c   :  { %v1021_v8 = vadd.f32 %v989_v54, %v3528_v2 }
 0x28d   :  { %v1090_v57 = vpop.permute.xlu1 %1089  ;;  %v1245_v59 = vld [vmem:[#allocation8] sm:$0xff] }
 0x28e   :  { %1215 = vst.msk [vmem:[#allocation8 + $0x10] sm:$0xff] %vm1212_vm1, %v1021_v8  ;;  %v900_v4 = vpop.permute.xlu0 %899  ;;  %v1277_v5 = vpack.c.bf16 %v1246_v61, %v1245_v59  ;;  %v163_v8 = vld [vmem:[%s4089_s1 + $0x40] sm:$0xff] }
 0x28f   :  { %1183 = vst.msk [vmem:[#allocation8 + $0x18] sm:$0xff] %vm1179_vm0, %v1090_v57  ;;  %v991_v2 = vmul.f32 %v900_v4, %v159_v34  ;;  %v165_v4 = vld [vmem:[%s4089_s1 + $0x50] sm:$0xff] }
 0x290   :  { %1216 = vst.msk [vmem:[#allocation8 + $0x18] sm:$0xff] %vm1212_vm1, %v1022_v55  ;;  %2679 = vmatprep.mubr.bf16.mxu1 %v1277_v5 }
 0x291   :  { %v1023_v1 = vadd.f32 %v991_v2, %v3536_v14  ;;  %v1094_v63 = vpop.permute.xlu1 %1093  ;;  %v2808_v14 = vld [vmem:[#allocation5 + $0x44] ss:$8 sps:$4 sm:$0xff]  }
 0x292   :  { %1185 = vst.msk [vmem:[#allocation8 + $0x28] sm:$0xff] %vm1179_vm0, %v1094_v63  ;;  %1689 = vmatprep.subr.bf16.mxu0 %v2808_v14 }
 0x293   :  { %1217 = vst.msk [vmem:[#allocation8 + $0x20] sm:$0xff] %vm1212_vm1, %v1023_v1  ;;  %1690 = vmatpush1.bf16.msra.mxu0 %v2806_v53 }
 0x294   :  { %1691 = vmatprep.subr.bf16.mxu0 %v2811_v42 }
 0x295   :  { %v902_v12 = vpop.permute.xlu1 %901  ;;  %v1247_v25 = vld [vmem:[#allocation8 + $0x10] sm:$0xff] }
 0x296   :  { %v992_v27 = vmul.f32 %v902_v12, %v160_v7  ;;  %v904_v28 = vpop.permute.xlu0 %903 }
 0x297   :  { %v1248_v30 = vld [vmem:[#allocation8 + $0x18] sm:$0xff]  ;;  %v993_v33 = vmul.f32 %v904_v28, %v161_v10 }
 0x298   :  { %v1278_v37 = vpack.c.bf16 %v1248_v30, %v1247_v25  ;;  %v1024_v38 = vadd.f32 %v992_v27, %v3540_v15  ;;  %v2809_v15 = vld [vmem:[#allocation5 + $0x50] ss:$8 sps:$4 sm:$0xff]  }
 0x299   :  { %v1025_v16 = vadd.f32 %v993_v33, %v3549_v26  ;;  %v906_v56 = vpop.permute.xlu1 %905  ;;  %1692 = vmatpush1.bf16.msra.mxu0 %v2809_v15  ;;  %v166_v10 = vld [vmem:[%s4089_s1 + $0x58] sm:$0xff] }
 0x29a   :  { %2680 = vmatmul.mubr.bf16.vlgmr.msra.gmra.mrb[64].mxu1 %v1278_v37  ;;  %1218 = vst.msk [vmem:[#allocation8 + $0x28] sm:$0xff] %vm1212_vm1, %v1024_v38  ;;  %v994_v43 = vmul.f32 %v906_v56, %v162_v36  ;;  %v1096_v44 = vpop.permute.xlu0 %1095  ;;  %v1249_v52 = vld [vmem:[#allocation8 + $0x20] sm:$0xff]  ;;  %1693 = vmatprep.subr.bf16.mxu0 %v2814_v58  ;;  %v169_v56 = vld [vmem:[%s4089_s1 + $0x70] sm:$0xff] }
 0x29b   :  { %1186 = vst.msk [vmem:[#allocation8 + $0x30] sm:$0xff] %vm1179_vm0, %v1096_v44 }
 0x29c   :  { %v1026_v46 = vadd.f32 %v994_v43, %v3546_v24  ;;  %1219 = vst.msk [vmem:[#allocation8 + $0x30] sm:$0xff] %vm1212_vm1, %v1025_v16  ;;  %v2812_v24 = vld [vmem:[#allocation5 + $0x60] ss:$8 sps:$4 sm:$0xff]  }
 0x29d   :  { %v1098_v54 = vpop.permute.xlu1 %1097  ;;  %1694 = vmatpush1.bf16.msra.mxu0 %v2812_v24  ;;  %v168_v16 = vld [vmem:[%s4089_s1 + $0x68] sm:$0xff] }
 0x29e   :  { %1187 = vst.msk [vmem:[#allocation8 + $0x38] sm:$0xff] %vm1179_vm0, %v1098_v54  ;;  %v1100_v26 = vpop.permute.xlu0 %1099 }
 0x29f   :  { %1220 = vst.msk [vmem:[#allocation8 + $0x38] sm:$0xff] %vm1212_vm1, %v1026_v46 }
 0x2a0   :  { %1188 = vst.msk [vmem:[#allocation8 + $0x40] sm:$0xff] %vm1179_vm0, %v1100_v26  ;;  %v170_v26 = vld [vmem:[%s4089_s1 + $0x78] sm:$0xff] }
 0x2a1   :  { %v1102_v34 = vpop.permute.xlu1 %1101  ;;  %v1250_v55 = vld [vmem:[#allocation8 + $0x28] sm:$0xff] }
 0x2a2   :  { %1189 = vst.msk [vmem:[#allocation8 + $0x48] sm:$0xff] %vm1179_vm0, %v1102_v34  ;;  %v908_v57 = vpop.permute.xlu0 %907  ;;  %v1279_v59 = vpack.c.bf16 %v1250_v55, %v1249_v52 }
 0x2a3   :  { %v995_v61 = vmul.f32 %v908_v57, %v163_v8  ;;  %v1251_v63 = vld [vmem:[#allocation8 + $0x30] sm:$0xff] }
 0x2a4   :  { %2683 = vmatprep.mubr.bf16.mxu1 %v1279_v59 }
 0x2a5   :  { %v1027_v5 = vadd.f32 %v995_v61, %v3563_v39  ;;  %v910_v2 = vpop.permute.xlu1 %909 }
 0x2a6   :  { %v996_v50 = vmul.f32 %v910_v2, %v164_v0  ;;  %v912_v1 = vpop.permute.xlu0 %911  ;;  %v1252_v6 = vld [vmem:[#allocation8 + $0x38] sm:$0xff] }
 0x2a7   :  { %1221 = vst.msk [vmem:[#allocation8 + $0x40] sm:$0xff] %vm1212_vm1, %v1027_v5  ;;  %v997_v7 = vmul.f32 %v912_v1, %v165_v4  ;;  %v1280_v11 = vpack.c.bf16 %v1252_v6, %v1251_v63  ;;  %v173_v1 = vld [vmem:[%s4089_s1 + $0x90] sm:$0xff] }
 0x2a8   :  { %v1028_v12 = vadd.f32 %v996_v50, %v3568_v41  ;;  %v167_v41 = vld [vmem:[%s4089_s1 + $0x60] sm:$0xff]  ;;  %v172_v50 = vld [vmem:[%s4089_s1 + $0x88] sm:$0xff] }
 0x2a9   :  { %v1029_v25 = vadd.f32 %v997_v7, %v3579_v40  ;;  %v914_v14 = vpop.permute.xlu1 %913  ;;  %2684 = vmatmul.mubr.bf16.gmra.mrb[68].mxu1 %v1280_v11 }
 0x2aa   :  { %1222 = vst.msk [vmem:[#allocation8 + $0x48] sm:$0xff] %vm1212_vm1, %v1028_v12  ;;  %v998_v39 = vmul.f32 %v914_v14, %v166_v10  ;;  %v1104_v27 = vpop.permute.xlu0 %1103  ;;  %v174_v14 = vld [vmem:[%s4089_s1 + $0x98] sm:$0xff] }
 0x2ab   :  { %1190 = vst.msk [vmem:[#allocation8 + $0x50] sm:$0xff] %vm1179_vm0, %v1104_v27 }
 0x2ac   :  { %v1030_v28 = vadd.f32 %v998_v39, %v3576_v9  ;;  %1223 = vst.msk [vmem:[#allocation8 + $0x50] sm:$0xff] %vm1212_vm1, %v1029_v25 }
 0x2ad   :  { %v1106_v30 = vpop.permute.xlu1 %1105 }
 0x2ae   :  { %1191 = vst.msk [vmem:[#allocation8 + $0x58] sm:$0xff] %vm1179_vm0, %v1106_v30  ;;  %v1108_v33 = vpop.permute.xlu0 %1107  ;;  %v1253_v36 = vld [vmem:[#allocation8 + $0x40] sm:$0xff] }
 0x2af   :  { %1224 = vst.msk [vmem:[#allocation8 + $0x58] sm:$0xff] %vm1212_vm1, %v1030_v28 }
 0x2b0   :  { %1192 = vst.msk [vmem:[#allocation8 + $0x60] sm:$0xff] %vm1179_vm0, %v1108_v33 }
 0x2b1   :  { %v1110_v40 = vpop.permute.xlu1 %1109  ;;  %v1254_v37 = vld [vmem:[#allocation8 + $0x48] sm:$0xff] }
 0x2b2   :  { %1193 = vst.msk [vmem:[#allocation8 + $0x68] sm:$0xff] %vm1179_vm0, %v1110_v40  ;;  %v916_v9 = vpop.permute.xlu0 %915  ;;  %v1281_v38 = vpack.c.bf16 %v1254_v37, %v1253_v36 }
 0x2b3   :  { %v999_v53 = vmul.f32 %v916_v9, %v167_v41  ;;  %v1255_v15 = vld [vmem:[#allocation8 + $0x50] sm:$0xff] }
 0x2b4   :  { %2687 = vmatprep.mubr.bf16.mxu1 %v1281_v38 }
 0x2b5   :  { %v1031_v42 = vadd.f32 %v999_v53, %v3589_v49  ;;  %v918_v43 = vpop.permute.xlu1 %917 }
 0x2b6   :  { %v1000_v44 = vmul.f32 %v918_v43, %v168_v16  ;;  %v920_v46 = vpop.permute.xlu0 %919  ;;  %v1256_v54 = vld [vmem:[#allocation8 + $0x58] sm:$0xff]  ;;  %v176_v16 = vld [vmem:[%s4089_s1 + $0xa8] sm:$0xff] }
 0x2b7   :  { %1225 = vst.msk [vmem:[#allocation8 + $0x60] sm:$0xff] %vm1212_vm1, %v1031_v42  ;;  %v1001_v58 = vmul.f32 %v920_v46, %v169_v56  ;;  %v1282_v8 = vpack.c.bf16 %v1256_v54, %v1255_v15  ;;  %v177_v56 = vld [vmem:[%s4089_s1 + $0xb0] sm:$0xff] }
 0x2b8   :  { %v1032_v24 = vadd.f32 %v1000_v44, %v3594_v51  ;;  %v171_v51 = vld [vmem:[%s4089_s1 + $0x80] sm:$0xff] }
 0x2b9   :  { %v1033_v34 = vadd.f32 %v1001_v58, %v3607_v3  ;;  %v922_v52 = vpop.permute.xlu1 %921  ;;  %2688 = vmatmul.mubr.bf16.gmra.mrb[72].mxu1 %v1282_v8 }
 0x2ba   :  { %1226 = vst.msk [vmem:[#allocation8 + $0x68] sm:$0xff] %vm1212_vm1, %v1032_v24  ;;  %v1002_v49 = vmul.f32 %v922_v52, %v170_v26  ;;  %v1112_v55 = vpop.permute.xlu0 %1111  ;;  %v178_v26 = vld [vmem:[%s4089_s1 + $0xb8] sm:$0xff] }
 0x2bb   :  { %1194 = vst.msk [vmem:[#allocation8 + $0x70] sm:$0xff] %vm1179_vm0, %v1112_v55 }
 0x2bc   :  { %v1034_v57 = vadd.f32 %v1002_v49, %v3604_v62  ;;  %1227 = vst.msk [vmem:[#allocation8 + $0x70] sm:$0xff] %vm1212_vm1, %v1033_v34 }
 0x2bd   :  { %v1114_v59 = vpop.permute.xlu1 %1113 }
 0x2be   :  { %1195 = vst.msk [vmem:[#allocation8 + $0x78] sm:$0xff] %vm1179_vm0, %v1114_v59  ;;  %v1116_v61 = vpop.permute.xlu0 %1115  ;;  %v1257_v0 = vld [vmem:[#allocation8 + $0x60] sm:$0xff] }
 0x2bf   :  { %1228 = vst.msk [vmem:[#allocation8 + $0x78] sm:$0xff] %vm1212_vm1, %v1034_v57 }
 0x2c0   :  { %1196 = vst.msk [vmem:[#allocation8 + $0x80] sm:$0xff] %vm1179_vm0, %v1116_v61 }
 0x2c1   :  { %v1118_v3 = vpop.permute.xlu1 %1117  ;;  %v1258_v4 = vld [vmem:[#allocation8 + $0x68] sm:$0xff] }
 0x2c2   :  { %1197 = vst.msk [vmem:[#allocation8 + $0x88] sm:$0xff] %vm1179_vm0, %v1118_v3  ;;  %v924_v62 = vpop.permute.xlu0 %923  ;;  %v1283_v5 = vpack.c.bf16 %v1258_v4, %v1257_v0  ;;  %v180_v4 = vld [vmem:[%s4089_s1 + $0xc8] sm:$0xff] }
 0x2c3   :  { %v1003_v2 = vmul.f32 %v924_v62, %v171_v51  ;;  %v1259_v11 = vld [vmem:[#allocation8 + $0x70] sm:$0xff] }
 0x2c4   :  { %2691 = vmatprep.mubr.bf16.mxu1 %v1283_v5  ;;  %v181_v62 = vld [vmem:[%s4089_s1 + $0xd0] sm:$0xff] }
 0x2c5   :  { %v1035_v63 = vadd.f32 %v1003_v2, %v3617_v18  ;;  %v926_v6 = vpop.permute.xlu1 %925 }
 0x2c6   :  { %v1004_v7 = vmul.f32 %v926_v6, %v172_v50  ;;  %v928_v10 = vpop.permute.xlu0 %927  ;;  %v1260_v12 = vld [vmem:[#allocation8 + $0x78] sm:$0xff] }
 0x2c7   :  { %1229 = vst.msk [vmem:[#allocation8 + $0x80] sm:$0xff] %vm1212_vm1, %v1035_v63  ;;  %v1005_v25 = vmul.f32 %v928_v10, %v173_v1  ;;  %v1284_v39 = vpack.c.bf16 %v1260_v12, %v1259_v11  ;;  %v182_v10 = vld [vmem:[%s4089_s1 + $0xd8] sm:$0xff] }
 0x2c8   :  { %v1036_v27 = vadd.f32 %v1004_v7, %v3625_v23 }
 0x2c9   :  { %v1037_v28 = vadd.f32 %v1005_v25, %v3622_v22  ;;  %v930_v30 = vpop.permute.xlu1 %929  ;;  %2692 = vmatmul.mubr.bf16.gmra.mrb[76].mxu1 %v1284_v39  ;;  %v175_v22 = vld [vmem:[%s4089_s1 + $0xa0] sm:$0xff] }
 0x2ca   :  { %1230 = vst.msk [vmem:[#allocation8 + $0x88] sm:$0xff] %vm1212_vm1, %v1036_v27  ;;  %v1006_v18 = vmul.f32 %v930_v30, %v174_v14  ;;  %v1120_v33 = vpop.permute.xlu0 %1119 }
 0x2cb   :  { %1198 = vst.msk [vmem:[#allocation8 + $0x90] sm:$0xff] %vm1179_vm0, %v1120_v33 }
 0x2cc   :  { %v1038_v41 = vadd.f32 %v1006_v18, %v3635_v35  ;;  %1231 = vst.msk [vmem:[#allocation8 + $0x90] sm:$0xff] %vm1212_vm1, %v1037_v28  ;;  %v2817_v18 = vld [vmem:[#allocation5 + $0x74] ss:$8 sps:$4 sm:$0xff]  }
 0x2cd   :  { %v1122_v40 = vpop.permute.xlu1 %1121  ;;  %1695 = vmatprep.subr.bf16.mxu0 %v2817_v18 }
 0x2ce   :  { %1199 = vst.msk [vmem:[#allocation8 + $0x98] sm:$0xff] %vm1179_vm0, %v1122_v40  ;;  %v1124_v36 = vpop.permute.xlu0 %1123  ;;  %v1261_v37 = vld [vmem:[#allocation8 + $0x80] sm:$0xff] }
 0x2cf   :  { %1232 = vst.msk [vmem:[#allocation8 + $0x98] sm:$0xff] %vm1212_vm1, %v1038_v41 }
 0x2d0   :  { %1200 = vst.msk [vmem:[#allocation8 + $0xa0] sm:$0xff] %vm1179_vm0, %v1124_v36 }
 0x2d1   :  { %v1126_v23 = vpop.permute.xlu1 %1125  ;;  %v1262_v9 = vld [vmem:[#allocation8 + $0x88] sm:$0xff] }
 0x2d2   :  { %1201 = vst.msk [vmem:[#allocation8 + $0xa8] sm:$0xff] %vm1179_vm0, %v1126_v23  ;;  %v932_v35 = vpop.permute.xlu0 %931  ;;  %v1285_v38 = vpack.c.bf16 %v1262_v9, %v1261_v37  ;;  %v184_v23 = vld [vmem:[%s4089_s1 + $0xe8] sm:$0xff]  ;;  %v185_v37 = vld [vmem:[%s4089_s1 + $0xf0] sm:$0xff] }
 0x2d3   :  { %v1007_v53 = vmul.f32 %v932_v35, %v175_v22  ;;  %v1263_v15 = vld [vmem:[#allocation8 + $0x90] sm:$0xff] }
 0x2d4   :  { %2695 = vmatprep.mubr.bf16.mxu1 %v1285_v38  ;;  %v3242_v38 = vmov 0  }
 0x2d5   :  { %v1039_v42 = vadd.f32 %v1007_v53, %v3645_v47  ;;  %v934_v43 = vpop.permute.xlu1 %933  ;;  %1713 = vmatprep.mubr.bf16.mxu0 %v3242_v38 }
 0x2d6   :  { %v1008_v44 = vmul.f32 %v934_v43, %v176_v16  ;;  %v936_v46 = vpop.permute.xlu0 %935  ;;  %v1264_v54 = vld [vmem:[#allocation8 + $0x98] sm:$0xff] }
 0x2d7   :  { %1233 = vst.msk [vmem:[#allocation8 + $0xa0] sm:$0xff] %vm1212_vm1, %v1039_v42  ;;  %v1009_v58 = vmul.f32 %v936_v46, %v177_v56  ;;  %v1286_v8 = vpack.c.bf16 %v1264_v54, %v1263_v15 }
 0x2d8   :  { %v1040_v24 = vadd.f32 %v1008_v44, %v3653_v29  ;;  %v186_v44 = vld [vmem:[%s4089_s1 + $0xf8] sm:$0xff] }
 0x2d9   :  { %v1041_v34 = vadd.f32 %v1009_v58, %v3650_v13  ;;  %v938_v52 = vpop.permute.xlu1 %937  ;;  %2696 = vmatmul.mubr.bf16.gmra.mrb[80].mxu1 %v1286_v8  ;;  %v179_v13 = vld [vmem:[%s4089_s1 + $0xc0] sm:$0xff] }
 0x2da   :  { %1234 = vst.msk [vmem:[#allocation8 + $0xa8] sm:$0xff] %vm1212_vm1, %v1040_v24  ;;  %v1010_v47 = vmul.f32 %v938_v52, %v178_v26  ;;  %v1128_v49 = vpop.permute.xlu0 %1127 }
 0x2db   :  { %1202 = vst.msk [vmem:[#allocation8 + $0xb0] sm:$0xff] %vm1179_vm0, %v1128_v49 }
 0x2dc   :  { %v1042_v55 = vadd.f32 %v1010_v47, %v3663_v60  ;;  %1235 = vst.msk [vmem:[#allocation8 + $0xb0] sm:$0xff] %vm1212_vm1, %v1041_v34 }
 0x2dd   :  { %v1130_v57 = vpop.permute.xlu1 %1129 }
 0x2de   :  { %1203 = vst.msk [vmem:[#allocation8 + $0xb8] sm:$0xff] %vm1179_vm0, %v1130_v57  ;;  %v1132_v59 = vpop.permute.xlu0 %1131  ;;  %v1265_v61 = vld [vmem:[#allocation8 + $0xa0] sm:$0xff] }
 0x2df   :  { %1236 = vst.msk [vmem:[#allocation8 + $0xb8] sm:$0xff] %vm1212_vm1, %v1042_v55  ;;  %v3938_v55 = vld [vmem:[%s4094_s6 + $0x2] ss:$0 sm:$0xff] }
 0x2e0   :  { %1204 = vst.msk [vmem:[#allocation8 + $0xc0] sm:$0xff] %vm1179_vm0, %v1132_v59 }
 0x2e1   :  { %v1134_v29 = vpop.permute.xlu1 %1133  ;;  %v1266_v51 = vld [vmem:[#allocation8 + $0xa8] sm:$0xff] }
 0x2e2   :  { %1205 = vst.msk [vmem:[#allocation8 + $0xc8] sm:$0xff] %vm1179_vm0, %v1134_v29  ;;  %v940_v60 = vpop.permute.xlu0 %939  ;;  %v1287_v3 = vpack.c.bf16 %v1266_v51, %v1265_v61 }
 0x2e3   :  { %v1011_v0 = vmul.f32 %v940_v60, %v179_v13  ;;  %v1267_v63 = vld [vmem:[#allocation8 + $0xb0] sm:$0xff] }
 0x2e4   :  { %2699 = vmatprep.mubr.bf16.mxu1 %v1287_v3 }
 0x2e5   :  { %v1043_v5 = vadd.f32 %v1011_v0, %v3673_v17  ;;  %v942_v2 = vpop.permute.xlu1 %941 }
 0x2e6   :  { %v1012_v50 = vmul.f32 %v942_v2, %v180_v4  ;;  %v944_v1 = vpop.permute.xlu0 %943  ;;  %v1268_v6 = vld [vmem:[#allocation8 + $0xb8] sm:$0xff] }
 0x2e7   :  { %1237 = vst.msk [vmem:[#allocation8 + $0xc0] sm:$0xff] %vm1212_vm1, %v1043_v5  ;;  %v1013_v7 = vmul.f32 %v944_v1, %v181_v62  ;;  %v1288_v11 = vpack.c.bf16 %v1268_v6, %v1267_v63 }
 0x2e8   :  { %v1044_v12 = vadd.f32 %v1012_v50, %v3681_v20  ;;  %v2815_v20 = vld [vmem:[#allocation5 + $0x70] ss:$8 sps:$4 sm:$0xff]  }
 0x2e9   :  { %v1045_v25 = vadd.f32 %v1013_v7, %v3678_v19  ;;  %v946_v14 = vpop.permute.xlu1 %945  ;;  %2700 = vmatmul.mubr.bf16.gmra.mrb[84].mxu1 %v1288_v11  ;;  %v183_v19 = vld [vmem:[%s4089_s1 + $0xe0] sm:$0xff]  ;;  %1696 = vmatpush1.bf16.msra.mxu0 %v2815_v20 }
 0x2ea   :  { %1238 = vst.msk [vmem:[#allocation8 + $0xc8] sm:$0xff] %vm1212_vm1, %v1044_v12  ;;  %v1014_v17 = vmul.f32 %v946_v14, %v182_v10  ;;  %v1136_v39 = vpop.permute.xlu0 %1135 }
 0x2eb   :  { %1206 = vst.msk [vmem:[#allocation8 + $0xd0] sm:$0xff] %vm1179_vm0, %v1136_v39 }
 0x2ec   :  { %v1046_v27 = vadd.f32 %v1014_v17, %v3691_v31  ;;  %1239 = vst.msk [vmem:[#allocation8 + $0xd0] sm:$0xff] %vm1212_vm1, %v1045_v25 }
 0x2ed   :  { %v1138_v28 = vpop.permute.xlu1 %1137 }
 0x2ee   :  { %1207 = vst.msk [vmem:[#allocation8 + $0xd8] sm:$0xff] %vm1179_vm0, %v1138_v28  ;;  %v1140_v30 = vpop.permute.xlu0 %1139  ;;  %v1269_v41 = vld [vmem:[#allocation8 + $0xc0] sm:$0xff] }
 0x2ef   :  { %1240 = vst.msk [vmem:[#allocation8 + $0xd8] sm:$0xff] %vm1212_vm1, %v1046_v27 }
 0x2f0   :  { %1208 = vst.msk [vmem:[#allocation8 + $0xe0] sm:$0xff] %vm1179_vm0, %v1140_v30 }
 0x2f1   :  { %v1142_v33 = vpop.permute.xlu1 %1141  ;;  %v1270_v40 = vld [vmem:[#allocation8 + $0xc8] sm:$0xff] }
 0x2f2   :  { %1209 = vst.msk [vmem:[#allocation8 + $0xe8] sm:$0xff] %vm1179_vm0, %v1142_v33  ;;  %v948_v31 = vpop.permute.xlu0 %947  ;;  %v1289_v36 = vpack.c.bf16 %v1270_v40, %v1269_v41 }
 0x2f3   :  { %v1015_v22 = vmul.f32 %v948_v31, %v183_v19  ;;  %v1271_v56 = vld [vmem:[#allocation8 + $0xd0] sm:$0xff] }
 0x2f4   :  { %2703 = vmatprep.mubr.bf16.mxu1 %v1289_v36 }
 0x2f5   :  { %v1047_v9 = vadd.f32 %v1015_v22, %v3701_v21  ;;  %v950_v35 = vpop.permute.xlu1 %949 }
 0x2f6   :  { %v1016_v53 = vmul.f32 %v950_v35, %v184_v23  ;;  %v952_v16 = vpop.permute.xlu0 %951  ;;  %v1272_v42 = vld [vmem:[#allocation8 + $0xd8] sm:$0xff] }
 0x2f7   :  { %1241 = vst.msk [vmem:[#allocation8 + $0xe0] sm:$0xff] %vm1212_vm1, %v1047_v9  ;;  %v1017_v43 = vmul.f32 %v952_v16, %v185_v37  ;;  %v1290_v46 = vpack.c.bf16 %v1272_v42, %v1271_v56 }
 0x2f8   :  { %v1048_v15 = vadd.f32 %v1016_v53, %v3709_v32 }
 0x2f9   :  { %v1049_v21 = vadd.f32 %v1017_v43, %v3706_v45  ;;  %v954_v54 = vpop.permute.xlu1 %953  ;;  %2704 = vmatmul.mubr.bf16.gmra.mrb[88].mxu1 %v1290_v46 }
 0x2fa   :  { %1242 = vst.msk [vmem:[#allocation8 + $0xe8] sm:$0xff] %vm1212_vm1, %v1048_v15  ;;  %v1018_v58 = vmul.f32 %v954_v54, %v186_v44  ;;  %v1144_v26 = vpop.permute.xlu0 %1143 }
 0x2fb   :  { %1210 = vst.msk [vmem:[#allocation8 + $0xf0] sm:$0xff] %vm1179_vm0, %v1144_v26 }
 0x2fc   :  { %v1050_v8 = vadd.f32 %v1018_v58, %v3721_v48  ;;  %1243 = vst.msk [vmem:[#allocation8 + $0xf0] sm:$0xff] %vm1212_vm1, %v1049_v21 }
 0x2fd   :  { %v1146_v24 = vpop.permute.xlu1 %1145 }
 0x2fe   :  { %1211 = vst.msk [vmem:[#allocation8 + $0xf8] sm:$0xff] %vm1179_vm0, %v1146_v24  ;;  %v1273_v32 = vld [vmem:[#allocation8 + $0xe0] sm:$0xff] }
 0x2ff   :  { %1244 = vst.msk [vmem:[#allocation8 + $0xf8] sm:$0xff] %vm1212_vm1, %v1050_v8 }
 0x301   :  { %v1274_v34 = vld [vmem:[#allocation8 + $0xe8] sm:$0xff] }
 0x302   :  { %v1291_v45 = vpack.c.bf16 %v1274_v34, %v1273_v32 }
 0x303   :  { %v1275_v52 = vld [vmem:[#allocation8 + $0xf0] sm:$0xff] }
 0x304   :  { %2707 = vmatprep.mubr.bf16.mxu1 %v1291_v45 }
 0x306   :  { %v1276_v47 = vld [vmem:[#allocation8 + $0xf8] sm:$0xff] }
 0x307   :  { %v1292_v49 = vpack.c.bf16 %v1276_v47, %v1275_v52 }
 0x309   :  { %2708 = vmatmul.mubr.bf16.gmra.mrb[92].mxu1 %v1292_v49 }
 0x36d   :  { %v2681_v48 = vpop.f32.mrb[64].mxu1 }
 0x36e   :  { %v1407_v57 = vadd.f32 %v2681_v48, %v3938_v55  ;;  %v1398_v59 = vpop.f32.mrb[65].mxu1 }
 0x36f   :  { %v1399_v13 = vadd.f32 %v3938_v55, %v1398_v59  ;;  %v2682_v29 = vpop.f32.mrb[66].mxu1 }
 0x370   :  { %v1410_v61 = vadd.f32 %v2682_v29, %v3938_v55  ;;  %v1401_v51 = vpop.f32.mrb[67].mxu1  ;;  %v1527_v3 = vmax.f32 %v1407_v57, 0.0 }
 0x371   :  { %v1402_v60 = vadd.f32 %v3938_v55, %v1401_v51  ;;  %v1525_v4 = vmax.f32 %v1399_v13, 0.0 }
 0x372   :  { %v1528_v0 = vmax.f32 %v1410_v61, 0.0 }
 0x373   :  { %v1526_v62 = vmax.f32 %v1402_v60, 0.0 }
 0x374   :  { %v1558_v5 = vpack.c.bf16 %v1528_v0, %v1527_v3 }
 0x375   :  { %v1557_v2 = vpack.c.bf16 %v1526_v62, %v1525_v4 }
 0x377   :  { %1714 = vmatmul.mubr.bf16.vlgmr.msra.gmra.mrb[32].mxu0 %v1557_v2 }
 0x378   :  { %1723 = vmatprep.mubr.bf16.mxu0 %v3242_v38 }
 0x37c   :  { %v2685_v50 = vpop.f32.mrb[68].mxu1 }
 0x37d   :  { %v1423_v1 = vadd.f32 %v2685_v50, %v3938_v55  ;;  %v1414_v63 = vpop.f32.mrb[69].mxu1 }
 0x37e   :  { %v1415_v6 = vadd.f32 %v3938_v55, %v1414_v63  ;;  %v2686_v7 = vpop.f32.mrb[70].mxu1 }
 0x37f   :  { %1724 = vmatmul.mubr.bf16.gmra.mrb[36].mxu0 %v1558_v5  ;;  %v1426_v10 = vadd.f32 %v2686_v7, %v3938_v55  ;;  %v1417_v11 = vpop.f32.mrb[71].mxu1  ;;  %v1531_v25 = vmax.f32 %v1423_v1, 0.0 }
 0x380   :  { %1733 = vmatprep.mubr.bf16.mxu0 %v3242_v38  ;;  %v1418_v12 = vadd.f32 %v3938_v55, %v1417_v11  ;;  %v1529_v17 = vmax.f32 %v1415_v6, 0.0 }
 0x381   :  { %v1532_v14 = vmax.f32 %v1426_v10, 0.0 }
 0x382   :  { %v1530_v39 = vmax.f32 %v1418_v12, 0.0 }
 0x383   :  { %v1560_v27 = vpack.c.bf16 %v1532_v14, %v1531_v25 }
 0x384   :  { %v1559_v28 = vpack.c.bf16 %v1530_v39, %v1529_v17 }
 0x387   :  { %1734 = vmatmul.mubr.bf16.gmra.mrb[40].mxu0 %v1559_v28 }
 0x388   :  { %1743 = vmatprep.mubr.bf16.mxu0 %v3242_v38 }
 0x38c   :  { %v2689_v30 = vpop.f32.mrb[72].mxu1 }
 0x38d   :  { %v1439_v19 = vadd.f32 %v2689_v30, %v3938_v55  ;;  %v1430_v20 = vpop.f32.mrb[73].mxu1 }
 0x38e   :  { %v1431_v18 = vadd.f32 %v3938_v55, %v1430_v20  ;;  %v2690_v33 = vpop.f32.mrb[74].mxu1 }
 0x38f   :  { %1744 = vmatmul.mubr.bf16.gmra.mrb[44].mxu0 %v1560_v27  ;;  %v1442_v41 = vadd.f32 %v2690_v33, %v3938_v55  ;;  %v1433_v40 = vpop.f32.mrb[75].mxu1  ;;  %v1535_v36 = vmax.f32 %v1439_v19, 0.0 }
 0x390   :  { %1753 = vmatprep.mubr.bf16.mxu0 %v3242_v38  ;;  %v1434_v31 = vadd.f32 %v3938_v55, %v1433_v40  ;;  %v1533_v23 = vmax.f32 %v1431_v18, 0.0 }
 0x391   :  { %v1536_v22 = vmax.f32 %v1442_v41, 0.0 }
 0x392   :  { %v1534_v37 = vmax.f32 %v1434_v31, 0.0 }
 0x393   :  { %v1562_v9 = vpack.c.bf16 %v1536_v22, %v1535_v36 }
 0x394   :  { %v1561_v35 = vpack.c.bf16 %v1534_v37, %v1533_v23 }
 0x397   :  { %1754 = vmatmul.mubr.bf16.gmra.mrb[48].mxu0 %v1561_v35 }
 0x398   :  { %1763 = vmatprep.mubr.bf16.mxu0 %v3242_v38 }
 0x39c   :  { %v2693_v53 = vpop.f32.mrb[76].mxu1 }
 0x39d   :  { %v1455_v16 = vadd.f32 %v2693_v53, %v3938_v55  ;;  %v1446_v56 = vpop.f32.mrb[77].mxu1 }
 0x39e   :  { %v1447_v42 = vadd.f32 %v3938_v55, %v1446_v56  ;;  %v2694_v43 = vpop.f32.mrb[78].mxu1 }
 0x39f   :  { %1764 = vmatmul.mubr.bf16.gmra.mrb[52].mxu0 %v1562_v9  ;;  %v1458_v44 = vadd.f32 %v2694_v43, %v3938_v55  ;;  %v1449_v46 = vpop.f32.mrb[79].mxu1  ;;  %v1539_v21 = vmax.f32 %v1455_v16, 0.0 }
 0x3a0   :  { %1773 = vmatprep.mubr.bf16.mxu0 %v3242_v38  ;;  %v1450_v15 = vadd.f32 %v3938_v55, %v1449_v46  ;;  %v1537_v58 = vmax.f32 %v1447_v42, 0.0 }
 0x3a1   :  { %v1540_v54 = vmax.f32 %v1458_v44, 0.0 }
 0x3a2   :  { %v1538_v26 = vmax.f32 %v1450_v15, 0.0 }
 0x3a3   :  { %v1564_v8 = vpack.c.bf16 %v1540_v54, %v1539_v21  ;;  %v1591_v21 = vlaneseq }
 0x3a4   :  { %v1563_v24 = vpack.c.bf16 %v1538_v26, %v1537_v58  ;;  %v1589_v26 = vld [vmem:[%s4094_s6 + $0x3] sm:$0x3]  ;;  %s3243_s6 = smov [#allocation8]  }
 0x3a5   :  { %v1592_v54 = vshrl.u32 %v1591_v21, 7  ;;  %s2339_s10 = sshll.u32 %s3243_s6, 4  ;;  %s2340_s10 = int_to_ptr.vmem [resolvable:$true] %s2339_s10 }
 0x3a6   :  { %s3182_s11 = scalar_lea.vmem %s2340_s10, 4096  ;;  %p3187_p3 = scmp.lt.s32.totalorder %s2340_s10, %s2340_s10 }
 0x3a7   :  { %1774 = vmatmul.mubr.bf16.gmra.mrb[56].mxu0 %v1563_v24  ;;  %v1593_v58 = vsub.s32 0, %v1592_v54  ;;  %p3183_p2 = scmp.ne.s32.totalorder %s2340_s10, %s3182_s11  ;;  %p3188_p4 = scmp.lt.s32.totalorder %s3182_s11, %s3182_s11 }
 0x3a8   :  { %1783 = vmatprep.mubr.bf16.mxu0 %v3242_v38 }
 0x3a9   :  { %v3990_v24 = vrot.slane %v1589_v26, %v1593_v58  ;;  %p3189_p5 = por %p3188_p4, %p3187_p3 }
 0x3ab   :  { %p3190_p6 = pnand %p3189_p5, %p3183_p2 }
 0x3ac   :  { %v2697_v32 = vpop.f32.mrb[80].mxu1 }
 0x3ad   :  { %v1471_v34 = vadd.f32 %v2697_v32, %v3938_v55  ;;  %v1462_v45 = vpop.f32.mrb[81].mxu1 }
 0x3ae   :  { %v1463_v52 = vadd.f32 %v3938_v55, %v1462_v45  ;;  %v2698_v47 = vpop.f32.mrb[82].mxu1 }
 0x3af   :  { %1784 = vmatmul.mubr.bf16.gmra.mrb[60].mxu0 %v1564_v8  ;;  %v1474_v49 = vadd.f32 %v2698_v47, %v3938_v55  ;;  %v1465_v48 = vpop.f32.mrb[83].mxu1  ;;  %v1543_v59 = vmax.f32 %v1471_v34, 0.0  ;;  %v1597_v8 = vsub.s32 1, %v1592_v54 }
 0x3b0   :  { %1793 = vmatprep.mubr.bf16.mxu0 %v3242_v38  ;;  %v1466_v57 = vadd.f32 %v3938_v55, %v1465_v48  ;;  %v1541_v29 = vmax.f32 %v1463_v52, 0.0 }
 0x3b1   :  { %v1544_v13 = vmax.f32 %v1474_v49, 0.0 }
 0x3b2   :  { %v1542_v61 = vmax.f32 %v1466_v57, 0.0 }
 0x3b3   :  { %v1566_v51 = vpack.c.bf16 %v1544_v13, %v1543_v59 }
 0x3b4   :  { %v1565_v60 = vpack.c.bf16 %v1542_v61, %v1541_v29 }
 0x3b7   :  { %1794 = vmatmul.mubr.bf16.gmra.mrb[64].mxu0 %v1565_v60 }
 0x3b8   :  { %1803 = vmatprep.mubr.bf16.mxu0 %v3242_v38 }
 0x3bc   :  { %v2701_v3 = vpop.f32.mrb[84].mxu1 }
 0x3bd   :  { %v1487_v0 = vadd.f32 %v2701_v3, %v3938_v55  ;;  %v1478_v4 = vpop.f32.mrb[85].mxu1 }
 0x3be   :  { %v1479_v62 = vadd.f32 %v3938_v55, %v1478_v4  ;;  %v2702_v5 = vpop.f32.mrb[86].mxu1 }
 0x3bf   :  { %1804 = vmatmul.mubr.bf16.gmra.mrb[68].mxu0 %v1566_v51  ;;  %v1490_v2 = vadd.f32 %v2702_v5, %v3938_v55  ;;  %v1481_v50 = vpop.f32.mrb[87].mxu1  ;;  %v1547_v63 = vmax.f32 %v1487_v0, 0.0 }
 0x3c0   :  { %1813 = vmatprep.mubr.bf16.mxu0 %v3242_v38  ;;  %v1482_v1 = vadd.f32 %v3938_v55, %v1481_v50  ;;  %v1545_v7 = vmax.f32 %v1479_v62, 0.0 }
 0x3c1   :  { %v1548_v6 = vmax.f32 %v1490_v2, 0.0 }
 0x3c2   :  { %v1546_v10 = vmax.f32 %v1482_v1, 0.0 }
 0x3c3   :  { %v1568_v11 = vpack.c.bf16 %v1548_v6, %v1547_v63 }
 0x3c4   :  { %v1567_v12 = vpack.c.bf16 %v1546_v10, %v1545_v7 }
 0x3c7   :  { %1814 = vmatmul.mubr.bf16.gmra.mrb[72].mxu0 %v1567_v12 }
 0x3c8   :  { %1823 = vmatprep.mubr.bf16.mxu0 %v3242_v38 }
 0x3cc   :  { %v2705_v25 = vpop.f32.mrb[88].mxu1 }
 0x3cd   :  { %v1503_v14 = vadd.f32 %v2705_v25, %v3938_v55  ;;  %v1494_v17 = vpop.f32.mrb[89].mxu1 }
 0x3ce   :  { %v1495_v39 = vadd.f32 %v3938_v55, %v1494_v17  ;;  %v2706_v27 = vpop.f32.mrb[90].mxu1 }
 0x3cf   :  { %1824 = vmatmul.mubr.bf16.gmra.mrb[76].mxu0 %v1568_v11  ;;  %v1506_v28 = vadd.f32 %v2706_v27, %v3938_v55  ;;  %v1497_v30 = vpop.f32.mrb[91].mxu1  ;;  %v1551_v20 = vmax.f32 %v1503_v14, 0.0 }
 0x3d0   :  { %1833 = vmatprep.mubr.bf16.mxu0 %v3242_v38  ;;  %v1498_v19 = vadd.f32 %v3938_v55, %v1497_v30  ;;  %v1549_v33 = vmax.f32 %v1495_v39, 0.0 }
 0x3d1   :  { %v1552_v18 = vmax.f32 %v1506_v28, 0.0 }
 0x3d2   :  { %v1550_v41 = vmax.f32 %v1498_v19, 0.0 }
 0x3d3   :  { %v1570_v40 = vpack.c.bf16 %v1552_v18, %v1551_v20 }
 0x3d4   :  { %v1569_v31 = vpack.c.bf16 %v1550_v41, %v1549_v33 }
 0x3d7   :  { %1834 = vmatmul.mubr.bf16.gmra.mrb[80].mxu0 %v1569_v31 }
 0x3d8   :  { %1843 = vmatprep.mubr.bf16.mxu0 %v3242_v38 }
 0x3dc   :  { %v2709_v36 = vpop.f32.mrb[92].mxu1 }
 0x3dd   :  { %v1519_v22 = vadd.f32 %v2709_v36, %v3938_v55  ;;  %v1510_v23 = vpop.f32.mrb[93].mxu1 }
 0x3de   :  { %v1511_v37 = vadd.f32 %v3938_v55, %v1510_v23  ;;  %v2710_v9 = vpop.f32.mrb[94].mxu1 }
 0x3df   :  { %1844 = vmatmul.mubr.bf16.gmra.mrb[84].mxu0 %v1570_v40  ;;  %v1522_v35 = vadd.f32 %v2710_v9, %v3938_v55  ;;  %v1513_v53 = vpop.f32.mrb[95].mxu1  ;;  %v1555_v56 = vmax.f32 %v1519_v22, 0.0 }
 0x3e0   :  { %1853 = vmatprep.mubr.bf16.mxu0 %v3242_v38  ;;  %v1514_v16 = vadd.f32 %v3938_v55, %v1513_v53  ;;  %v1553_v43 = vmax.f32 %v1511_v37, 0.0  ;;  %v3992_v55 = vrot.slane %v1589_v26, %v1597_v8 }
 0x3e1   :  { %v1556_v42 = vmax.f32 %v1522_v35, 0.0 }
 0x3e2   :  { %v1554_v44 = vmax.f32 %v1514_v16, 0.0 }
 0x3e3   :  { %v1572_v46 = vpack.c.bf16 %v1556_v42, %v1555_v56 }
 0x3e4   :  { %v1571_v15 = vpack.c.bf16 %v1554_v44, %v1553_v43 }
 0x3e7   :  { %1854 = vmatmul.mubr.bf16.gmra.mrb[88].mxu0 %v1571_v15 }
 0x3e8   :  { %1863 = vmatprep.mubr.bf16.mxu0 %v3242_v38 }
 0x3ef   :  { %1864 = vmatmul.mubr.bf16.gmra.mrb[92].mxu0 %v1572_v46 }
 0x44a   :  { %v1715_v32 = vpop.f32.mrb[32].mxu0 }
 0x44b   :  { %v1716_v34 = vadd.f32 %v1715_v32, %v3990_v24  ;;  %v1717_v45 = vpop.f32.mrb[33].mxu0 }
 0x44c   :  { %v1718_v52 = vadd.f32 %v1717_v45, %v3992_v55  ;;  %v1719_v38 = vpop.f32.mrb[34].mxu0 }
 0x44d   :  { %v1874_v47 = vsub.f32 0.0, %v1716_v34  ;;  %v1720_v49 = vadd.f32 %v1719_v38, %v3990_v24  ;;  %v1721_v48 = vpop.f32.mrb[35].mxu0 }
 0x44e   :  { %v1875_v57 = vsub.f32 0.0, %v1718_v52  ;;  %v1722_v59 = vadd.f32 %v1721_v48, %v3992_v55 }
 0x44f   :  { %v1938_v13 = vmul.f32 1.442695, %v1874_v47  ;;  %v1876_v29 = vsub.f32 0.0, %v1720_v49 }
 0x450   :  { %v1940_v61 = vmul.f32 1.442695, %v1875_v57  ;;  %v1877_v51 = vsub.f32 0.0, %v1722_v59 }
 0x451   :  { %2882 = vpow2.f32 %v1938_v13  ;;  %v1942_v60 = vmul.f32 1.442695, %v1876_v29 }
 0x452   :  { %2884 = vpow2.f32 %v1940_v61  ;;  %v1944_v3 = vmul.f32 1.442695, %v1877_v51  ;;  %v1725_v0 = vpop.f32.mrb[36].mxu0 }
 0x453   :  { %2886 = vpow2.f32 %v1942_v60  ;;  %v1726_v4 = vadd.f32 %v1725_v0, %v3990_v24  ;;  %v1727_v62 = vpop.f32.mrb[37].mxu0 }
 0x454   :  { %2888 = vpow2.f32 %v1944_v3  ;;  %v1728_v5 = vadd.f32 %v1727_v62, %v3992_v55  ;;  %v1729_v2 = vpop.f32.mrb[38].mxu0 }
 0x455   :  { %v1878_v50 = vsub.f32 0.0, %v1726_v4  ;;  %v1730_v1 = vadd.f32 %v1729_v2, %v3990_v24  ;;  %v1731_v63 = vpop.f32.mrb[39].mxu0 }
 0x456   :  { %v1879_v6 = vsub.f32 0.0, %v1728_v5  ;;  %v1732_v7 = vadd.f32 %v1731_v63, %v3992_v55 }
 0x457   :  { %v1946_v10 = vmul.f32 1.442695, %v1878_v50  ;;  %v1880_v11 = vsub.f32 0.0, %v1730_v1 }
 0x458   :  { %v1948_v12 = vmul.f32 1.442695, %v1879_v6  ;;  %v1881_v25 = vsub.f32 0.0, %v1732_v7 }
 0x459   :  { %2890 = vpow2.f32 %v1946_v10  ;;  %v1950_v14 = vmul.f32 1.442695, %v1880_v11 }
 0x45a   :  { %2892 = vpow2.f32 %v1948_v12  ;;  %v1952_v17 = vmul.f32 1.442695, %v1881_v25  ;;  %v1735_v39 = vpop.f32.mrb[40].mxu0 }
 0x45b   :  { %v2883_v27 = vpop.eup %2882  ;;  %2894 = vpow2.f32 %v1950_v14  ;;  %v1736_v28 = vadd.f32 %v1735_v39, %v3990_v24  ;;  %v1737_v30 = vpop.f32.mrb[41].mxu0 }
 0x45c   :  { %v2885_v19 = vpop.eup %2884  ;;  %v2066_v20 = vadd.f32 1.0, %v2883_v27  ;;  %2896 = vpow2.f32 %v1952_v17  ;;  %v1738_v18 = vadd.f32 %v1737_v30, %v3992_v55  ;;  %v1739_v33 = vpop.f32.mrb[42].mxu0 }
 0x45d   :  { %v2887_v41 = vpop.eup %2886  ;;  %v2067_v40 = vadd.f32 1.0, %v2885_v19  ;;  %v1882_v31 = vsub.f32 0.0, %v1736_v28  ;;  %v1740_v36 = vadd.f32 %v1739_v33, %v3990_v24  ;;  %v1741_v22 = vpop.f32.mrb[43].mxu0 }
 0x45e   :  { %v2889_v23 = vpop.eup %2888  ;;  %2898 = vrcp.f32 %v2066_v20  ;;  %v2068_v37 = vadd.f32 1.0, %v2887_v41  ;;  %v1883_v9 = vsub.f32 0.0, %v1738_v18  ;;  %v1742_v35 = vadd.f32 %v1741_v22, %v3992_v55 }
 0x45f   :  { %2900 = vrcp.f32 %v2067_v40  ;;  %v2069_v53 = vadd.f32 1.0, %v2889_v23  ;;  %v1954_v16 = vmul.f32 1.442695, %v1882_v31  ;;  %v1884_v56 = vsub.f32 0.0, %v1740_v36 }
 0x460   :  { %2902 = vrcp.f32 %v2068_v37  ;;  %v1956_v42 = vmul.f32 1.442695, %v1883_v9  ;;  %v1885_v43 = vsub.f32 0.0, %v1742_v35 }
 0x461   :  { %2904 = vrcp.f32 %v2069_v53  ;;  %v1958_v44 = vmul.f32 1.442695, %v1884_v56 }
 0x462   :  { %2906 = vpow2.f32 %v1954_v16  ;;  %v1960_v46 = vmul.f32 1.442695, %v1885_v43  ;;  %v1745_v15 = vpop.f32.mrb[44].mxu0 }
 0x463   :  { %v2891_v21 = vpop.eup %2890  ;;  %2908 = vpow2.f32 %v1956_v42  ;;  %v1746_v54 = vadd.f32 %v1745_v15, %v3990_v24  ;;  %v1747_v58 = vpop.f32.mrb[45].mxu0 }
 0x464   :  { %v2893_v26 = vpop.eup %2892  ;;  %v2070_v8 = vadd.f32 1.0, %v2891_v21  ;;  %2910 = vpow2.f32 %v1958_v44  ;;  %v1748_v32 = vadd.f32 %v1747_v58, %v3992_v55  ;;  %v1749_v34 = vpop.f32.mrb[46].mxu0 }
 0x465   :  { %v2895_v45 = vpop.eup %2894  ;;  %v2071_v52 = vadd.f32 1.0, %v2893_v26  ;;  %2912 = vpow2.f32 %v1960_v46  ;;  %v1886_v38 = vsub.f32 0.0, %v1746_v54  ;;  %v1750_v47 = vadd.f32 %v1749_v34, %v3990_v24  ;;  %v1751_v49 = vpop.f32.mrb[47].mxu0 }
 0x466   :  { %v2897_v48 = vpop.eup %2896  ;;  %2914 = vrcp.f32 %v2070_v8  ;;  %v2072_v57 = vadd.f32 1.0, %v2895_v45  ;;  %v1887_v59 = vsub.f32 0.0, %v1748_v32  ;;  %v1752_v13 = vadd.f32 %v1751_v49, %v3992_v55 }
 0x467   :  { %2916 = vrcp.f32 %v2071_v52  ;;  %v2073_v29 = vadd.f32 1.0, %v2897_v48  ;;  %v1962_v61 = vmul.f32 1.442695, %v1886_v38  ;;  %v1888_v51 = vsub.f32 0.0, %v1750_v47 }
 0x468   :  { %v2899_v60 = vpop.eup %2898  ;;  %2918 = vrcp.f32 %v2072_v57  ;;  %v1964_v3 = vmul.f32 1.442695, %v1887_v59  ;;  %v1889_v0 = vsub.f32 0.0, %v1752_v13 }
 0x469   :  { %v2901_v4 = vpop.eup %2900  ;;  %2258 = vst [vmem:[#allocation7] sm:$0xff] %v2899_v60  ;;  %2920 = vrcp.f32 %v2073_v29  ;;  %v1966_v62 = vmul.f32 1.442695, %v1888_v51 }
 0x46a   :  { %v2903_v5 = vpop.eup %2902  ;;  %2259 = vst [vmem:[#allocation7 + $0x8] sm:$0xff] %v2901_v4  ;;  %2922 = vpow2.f32 %v1962_v61  ;;  %v1968_v2 = vmul.f32 1.442695, %v1889_v0  ;;  %v1755_v50 = vpop.f32.mrb[48].mxu0 }
 0x46b   :  { %v2905_v1 = vpop.eup %2904  ;;  %2260 = vst [vmem:[#allocation7 + $0x10] sm:$0xff] %v2903_v5  ;;  %2924 = vpow2.f32 %v1964_v3  ;;  %v1756_v63 = vadd.f32 %v1755_v50, %v3990_v24  ;;  %v1757_v6 = vpop.f32.mrb[49].mxu0 }
 0x46c   :  { %3193 = shalt.err (!%p3190_p6)
}
 0x46d   :  { %s3194_s13 = scalar_lea.hbm %s4096_s8, 4096 }
 0x46e   :  { %p3195_p7 = scmp.ne.s32.totalorder %s4096_s8, %s3194_s13  ;;  %p3198_p8 = scmp.lt.u32.totalorder %s3194_s13, %s4096_s8 }
 0x470   :  { %p3200_p9 = pnand %p3198_p8, %p3195_p7 }
 0x472   :  { %3203 = shalt.err (!%p3200_p9)
}
 0x473   :  { %2345 = dma.vmem_to_hbm [thread:$0]  %s2340_s10, 4096, %s4096_s8, [#allocation9], %s3238_s0, %s3238_s0, %s3239_s28   ;;  %v2907_v7 = vpop.eup %2906  ;;  %2261 = vst [vmem:[#allocation7 + $0x18] sm:$0xff] %v2905_v1  ;;  %2926 = vpow2.f32 %v1966_v62  ;;  %v1758_v10 = vadd.f32 %v1757_v6, %v3992_v55  ;;  %v1759_v11 = vpop.f32.mrb[50].mxu0  ;;  %v1890_v14 = vsub.f32 0.0, %v1756_v63 }
 0x474   :  { %v2909_v12 = vpop.eup %2908  ;;  %v2074_v25 = vadd.f32 1.0, %v2907_v7  ;;  %2928 = vpow2.f32 %v1968_v2  ;;  %v1760_v17 = vadd.f32 %v1759_v11, %v3990_v24  ;;  %v1761_v39 = vpop.f32.mrb[51].mxu0  ;;  %s3244_s8 = smov [#allocation7]  }
 0x475   :  { %v2911_v27 = vpop.eup %2910  ;;  %v2075_v28 = vadd.f32 1.0, %v2909_v12  ;;  %v1891_v30 = vsub.f32 0.0, %v1758_v10  ;;  %v1762_v19 = vadd.f32 %v1761_v39, %v3992_v55  ;;  %v1970_v33 = vmul.f32 1.442695, %v1890_v14  ;;  %v1765_v53 = vpop.f32.mrb[52].mxu0  ;;  %s2327_s0 = sshll.u32 %s3244_s8, 4  ;;  %s2328_s0 = int_to_ptr.vmem [resolvable:$true] %s2327_s0 }
 0x476   :  { %v2913_v20 = vpop.eup %2912  ;;  %2930 = vrcp.f32 %v2074_v25  ;;  %v2076_v18 = vadd.f32 1.0, %v2911_v27  ;;  %v1892_v41 = vsub.f32 0.0, %v1760_v17  ;;  %v1766_v56 = vadd.f32 %v1765_v53, %v3990_v24  ;;  %v1767_v42 = vpop.f32.mrb[53].mxu0  ;;  %s3204_s28 = scalar_lea.vmem %s2328_s0, 8192  ;;  %p3209_p11 = scmp.lt.s32.totalorder %s2328_s0, %s2328_s0 }
 0x477   :  { %v2915_v40 = vpop.eup %2914  ;;  %2932 = vrcp.f32 %v2075_v28  ;;  %v2077_v31 = vadd.f32 1.0, %v2913_v20  ;;  %v1972_v36 = vmul.f32 1.442695, %v1891_v30  ;;  %v1893_v22 = vsub.f32 0.0, %v1762_v19  ;;  %v1769_v46 = vpop.f32.mrb[54].mxu0  ;;  %p3205_p10 = scmp.ne.s32.totalorder %s2328_s0, %s3204_s28  ;;  %p3210_p12 = scmp.lt.s32.totalorder %s3204_s28, %s3204_s28 }
 0x478   :  { %v2917_v23 = vpop.eup %2916  ;;  %2262 = vst [vmem:[#allocation7 + $0x20] sm:$0xff] %v2915_v40  ;;  %2934 = vrcp.f32 %v2076_v18  ;;  %v1974_v37 = vmul.f32 1.442695, %v1892_v41  ;;  %v1768_v44 = vadd.f32 %v1767_v42, %v3992_v55  ;;  %v1894_v54 = vsub.f32 0.0, %v1766_v56  ;;  %v1771_v26 = vpop.f32.mrb[55].mxu0 }
 0x479   :  { %v2919_v9 = vpop.eup %2918  ;;  %2263 = vst [vmem:[#allocation7 + $0x28] sm:$0xff] %v2917_v23  ;;  %2936 = vrcp.f32 %v2077_v31  ;;  %v1976_v35 = vmul.f32 1.442695, %v1893_v22  ;;  %v1770_v58 = vadd.f32 %v1769_v46, %v3990_v24  ;;  %v1772_v45 = vadd.f32 %v1771_v26, %v3992_v55  ;;  %p3211_p13 = por %p3210_p12, %p3209_p11 }
 0x47a   :  { %v2921_v16 = vpop.eup %2920  ;;  %2264 = vst [vmem:[#allocation7 + $0x30] sm:$0xff] %v2919_v9  ;;  %2938 = vpow2.f32 %v1970_v33  ;;  %v1895_v34 = vsub.f32 0.0, %v1768_v44  ;;  %v1978_v47 = vmul.f32 1.442695, %v1894_v54  ;;  %v1775_v60 = vpop.f32.mrb[56].mxu0 }
 0x47b   :  { %v2923_v43 = vpop.eup %2922  ;;  %2265 = vst [vmem:[#allocation7 + $0x38] sm:$0xff] %v2921_v16  ;;  %2940 = vpow2.f32 %v1972_v36  ;;  %v1896_v49 = vsub.f32 0.0, %v1770_v58  ;;  %v1897_v59 = vsub.f32 0.0, %v1772_v45  ;;  %v1776_v0 = vadd.f32 %v1775_v60, %v3990_v24  ;;  %v1777_v4 = vpop.f32.mrb[57].mxu0  ;;  %p3212_p0 = pnand %p3211_p13, %p3205_p10 }
 0x47c   :  { %v2925_v15 = vpop.eup %2924  ;;  %v2078_v21 = vadd.f32 1.0, %v2923_v43  ;;  %2942 = vpow2.f32 %v1974_v37  ;;  %v1980_v57 = vmul.f32 1.442695, %v1895_v34  ;;  %v1778_v5 = vadd.f32 %v1777_v4, %v3992_v55  ;;  %v1779_v2 = vpop.f32.mrb[58].mxu0 }
 0x47d   :  { %v2927_v8 = vpop.eup %2926  ;;  %v2079_v32 = vadd.f32 1.0, %v2925_v15  ;;  %2944 = vpow2.f32 %v1976_v35  ;;  %v1982_v29 = vmul.f32 1.442695, %v1896_v49  ;;  %v1984_v51 = vmul.f32 1.442695, %v1897_v59  ;;  %v1781_v6 = vpop.f32.mrb[59].mxu0 }
 0x47e   :  { %v2929_v52 = vpop.eup %2928  ;;  %2946 = vrcp.f32 %v2078_v21  ;;  %v2080_v38 = vadd.f32 1.0, %v2927_v8  ;;  %v1898_v1 = vsub.f32 0.0, %v1776_v0  ;;  %v1780_v63 = vadd.f32 %v1779_v2, %v3990_v24 }
 0x47f   :  { %2948 = vrcp.f32 %v2079_v32  ;;  %v2081_v48 = vadd.f32 1.0, %v2929_v52  ;;  %v1899_v11 = vsub.f32 0.0, %v1778_v5  ;;  %v1782_v12 = vadd.f32 %v1781_v6, %v3992_v55 }
 0x480   :  { %v2931_v13 = vpop.eup %2930  ;;  %2950 = vrcp.f32 %v2080_v38  ;;  %v1900_v17 = vsub.f32 0.0, %v1780_v63  ;;  %v1986_v28 = vmul.f32 1.442695, %v1898_v1 }
 0x481   :  { %v2933_v61 = vpop.eup %2932  ;;  %2266 = vst [vmem:[#allocation7 + $0x40] sm:$0xff] %v2931_v13  ;;  %2952 = vrcp.f32 %v2081_v48  ;;  %v1901_v30 = vsub.f32 0.0, %v1782_v12  ;;  %v1988_v18 = vmul.f32 1.442695, %v1899_v11 }
 0x482   :  { %v2935_v3 = vpop.eup %2934  ;;  %2267 = vst [vmem:[#allocation7 + $0x48] sm:$0xff] %v2933_v61  ;;  %2954 = vpow2.f32 %v1978_v47  ;;  %v1990_v41 = vmul.f32 1.442695, %v1900_v17  ;;  %v1785_v40 = vpop.f32.mrb[60].mxu0 }
 0x483   :  { %v2937_v62 = vpop.eup %2936  ;;  %2268 = vst [vmem:[#allocation7 + $0x50] sm:$0xff] %v2935_v3  ;;  %2956 = vpow2.f32 %v1980_v57  ;;  %v1992_v36 = vmul.f32 1.442695, %v1901_v30  ;;  %v1786_v22 = vadd.f32 %v1785_v40, %v3990_v24  ;;  %v1787_v23 = vpop.f32.mrb[61].mxu0 }
 0x484   :  { %v2939_v50 = vpop.eup %2938  ;;  %2269 = vst [vmem:[#allocation7 + $0x58] sm:$0xff] %v2937_v62  ;;  %2958 = vpow2.f32 %v1982_v29  ;;  %v1788_v9 = vadd.f32 %v1787_v23, %v3992_v55  ;;  %v1789_v35 = vpop.f32.mrb[62].mxu0 }
 0x485   :  { %v2941_v7 = vpop.eup %2940  ;;  %v2082_v10 = vadd.f32 1.0, %v2939_v50  ;;  %2960 = vpow2.f32 %v1984_v51  ;;  %v1902_v16 = vsub.f32 0.0, %v1786_v22  ;;  %v1790_v56 = vadd.f32 %v1789_v35, %v3990_v24  ;;  %v1791_v42 = vpop.f32.mrb[63].mxu0 }
 0x486   :  { %v2943_v25 = vpop.eup %2942  ;;  %v2083_v14 = vadd.f32 1.0, %v2941_v7  ;;  %v1903_v46 = vsub.f32 0.0, %v1788_v9  ;;  %v1792_v15 = vadd.f32 %v1791_v42, %v3992_v55 }
 0x487   :  { %v2945_v39 = vpop.eup %2944  ;;  %2962 = vrcp.f32 %v2082_v10  ;;  %v2084_v27 = vadd.f32 1.0, %v2943_v25  ;;  %v1904_v58 = vsub.f32 0.0, %v1790_v56  ;;  %v1994_v32 = vmul.f32 1.442695, %v1902_v16 }
 0x488   :  { %v2947_v19 = vpop.eup %2946  ;;  %2964 = vrcp.f32 %v2083_v14  ;;  %v2085_v20 = vadd.f32 1.0, %v2945_v39  ;;  %v1905_v34 = vsub.f32 0.0, %v1792_v15  ;;  %v1996_v52 = vmul.f32 1.442695, %v1903_v46 }
 0x489   :  { %v2949_v33 = vpop.eup %2948  ;;  %2270 = vst [vmem:[#allocation7 + $0x60] sm:$0xff] %v2947_v19  ;;  %2966 = vrcp.f32 %v2084_v27  ;;  %v1998_v47 = vmul.f32 1.442695, %v1904_v58 }
 0x48a   :  { %v2951_v31 = vpop.eup %2950  ;;  %2271 = vst [vmem:[#allocation7 + $0x68] sm:$0xff] %v2949_v33  ;;  %2968 = vrcp.f32 %v2085_v20  ;;  %v1795_v49 = vpop.f32.mrb[64].mxu0  ;;  %v2000_v57 = vmul.f32 1.442695, %v1905_v34 }
 0x48b   :  { %v2953_v37 = vpop.eup %2952  ;;  %2272 = vst [vmem:[#allocation7 + $0x70] sm:$0xff] %v2951_v31  ;;  %2970 = vpow2.f32 %v1986_v28  ;;  %v1796_v59 = vadd.f32 %v1795_v49, %v3990_v24  ;;  %v1797_v13 = vpop.f32.mrb[65].mxu0 }
 0x48c   :  { %v2955_v53 = vpop.eup %2954  ;;  %2273 = vst [vmem:[#allocation7 + $0x78] sm:$0xff] %v2953_v37  ;;  %2972 = vpow2.f32 %v1988_v18  ;;  %v1798_v61 = vadd.f32 %v1797_v13, %v3992_v55  ;;  %v1799_v51 = vpop.f32.mrb[66].mxu0 }
 0x48d   :  { %v2957_v43 = vpop.eup %2956  ;;  %v2086_v44 = vadd.f32 1.0, %v2955_v53  ;;  %2974 = vpow2.f32 %v1990_v41  ;;  %v1906_v3 = vsub.f32 0.0, %v1796_v59  ;;  %v1800_v0 = vadd.f32 %v1799_v51, %v3990_v24  ;;  %v1801_v4 = vpop.f32.mrb[67].mxu0 }
 0x48e   :  { %v2959_v21 = vpop.eup %2958  ;;  %v2087_v54 = vadd.f32 1.0, %v2957_v43  ;;  %2976 = vpow2.f32 %v1992_v36  ;;  %v1907_v5 = vsub.f32 0.0, %v1798_v61  ;;  %v1802_v2 = vadd.f32 %v1801_v4, %v3992_v55 }
 0x48f   :  { %v2961_v26 = vpop.eup %2960  ;;  %2978 = vrcp.f32 %v2086_v44  ;;  %v2088_v8 = vadd.f32 1.0, %v2959_v21  ;;  %v1908_v63 = vsub.f32 0.0, %v1800_v0  ;;  %v2002_v25 = vmul.f32 1.442695, %v1906_v3 }
 0x490   :  { %2980 = vrcp.f32 %v2087_v54  ;;  %v2089_v45 = vadd.f32 1.0, %v2961_v26  ;;  %v1909_v10 = vsub.f32 0.0, %v1802_v2  ;;  %v2004_v39 = vmul.f32 1.442695, %v1907_v5 }
 0x491   :  { %v2963_v38 = vpop.eup %2962  ;;  %2982 = vrcp.f32 %v2088_v8  ;;  %v2006_v30 = vmul.f32 1.442695, %v1908_v63 }
 0x492   :  { %v2965_v48 = vpop.eup %2964  ;;  %2274 = vst [vmem:[#allocation7 + $0x80] sm:$0xff] %v2963_v38  ;;  %2984 = vrcp.f32 %v2089_v45  ;;  %v1805_v27 = vpop.f32.mrb[68].mxu0  ;;  %v2008_v33 = vmul.f32 1.442695, %v1909_v10 }
 0x493   :  { %v2967_v29 = vpop.eup %2966  ;;  %2275 = vst [vmem:[#allocation7 + $0x88] sm:$0xff] %v2965_v48  ;;  %2986 = vpow2.f32 %v1994_v32  ;;  %v1806_v19 = vadd.f32 %v1805_v27, %v3990_v24  ;;  %v1807_v20 = vpop.f32.mrb[69].mxu0 }
 0x494   :  { %v2969_v60 = vpop.eup %2968  ;;  %2276 = vst [vmem:[#allocation7 + $0x90] sm:$0xff] %v2967_v29  ;;  %2988 = vpow2.f32 %v1996_v52  ;;  %v1808_v41 = vadd.f32 %v1807_v20, %v3992_v55  ;;  %v1809_v40 = vpop.f32.mrb[70].mxu0 }
 0x495   :  { %v2971_v62 = vpop.eup %2970  ;;  %2277 = vst [vmem:[#allocation7 + $0x98] sm:$0xff] %v2969_v60  ;;  %2990 = vpow2.f32 %v1998_v47  ;;  %v1910_v36 = vsub.f32 0.0, %v1806_v19  ;;  %v1810_v22 = vadd.f32 %v1809_v40, %v3990_v24  ;;  %v1811_v23 = vpop.f32.mrb[71].mxu0 }
 0x496   :  { %v2973_v50 = vpop.eup %2972  ;;  %v2090_v1 = vadd.f32 1.0, %v2971_v62  ;;  %2992 = vpow2.f32 %v2000_v57  ;;  %v1911_v9 = vsub.f32 0.0, %v1808_v41  ;;  %v1812_v35 = vadd.f32 %v1811_v23, %v3992_v55 }
 0x497   :  { %v2975_v6 = vpop.eup %2974  ;;  %v2091_v7 = vadd.f32 1.0, %v2973_v50  ;;  %v1912_v56 = vsub.f32 0.0, %v1810_v22  ;;  %v2010_v21 = vmul.f32 1.442695, %v1910_v36 }
 0x498   :  { %v2977_v11 = vpop.eup %2976  ;;  %2994 = vrcp.f32 %v2090_v1  ;;  %v2092_v12 = vadd.f32 1.0, %v2975_v6  ;;  %v1913_v44 = vsub.f32 0.0, %v1812_v35  ;;  %v2012_v58 = vmul.f32 1.442695, %v1911_v9 }
 0x499   :  { %v2979_v14 = vpop.eup %2978  ;;  %2996 = vrcp.f32 %v2091_v7  ;;  %v2093_v17 = vadd.f32 1.0, %v2977_v11  ;;  %v2014_v32 = vmul.f32 1.442695, %v1912_v56 }
 0x49a   :  { %v2981_v28 = vpop.eup %2980  ;;  %2278 = vst [vmem:[#allocation7 + $0xa0] sm:$0xff] %v2979_v14  ;;  %2998 = vrcp.f32 %v2092_v12  ;;  %v1815_v26 = vpop.f32.mrb[72].mxu0  ;;  %v2016_v38 = vmul.f32 1.442695, %v1913_v44 }
 0x49b   :  { %v2983_v18 = vpop.eup %2982  ;;  %2279 = vst [vmem:[#allocation7 + $0xa8] sm:$0xff] %v2981_v28  ;;  %3000 = vrcp.f32 %v2093_v17  ;;  %v1816_v34 = vadd.f32 %v1815_v26, %v3990_v24  ;;  %v1817_v45 = vpop.f32.mrb[73].mxu0 }
 0x49c   :  { %v2985_v31 = vpop.eup %2984  ;;  %2280 = vst [vmem:[#allocation7 + $0xb0] sm:$0xff] %v2983_v18  ;;  %3002 = vpow2.f32 %v2002_v25  ;;  %v1818_v47 = vadd.f32 %v1817_v45, %v3992_v55  ;;  %v1819_v49 = vpop.f32.mrb[74].mxu0 }
 0x49d   :  { %v2987_v37 = vpop.eup %2986  ;;  %2281 = vst [vmem:[#allocation7 + $0xb8] sm:$0xff] %v2985_v31  ;;  %3004 = vpow2.f32 %v2004_v39  ;;  %v1914_v57 = vsub.f32 0.0, %v1816_v34  ;;  %v1820_v59 = vadd.f32 %v1819_v49, %v3990_v24  ;;  %v1821_v13 = vpop.f32.mrb[75].mxu0 }
 0x49e   :  { %v2989_v53 = vpop.eup %2988  ;;  %v2094_v16 = vadd.f32 1.0, %v2987_v37  ;;  %3006 = vpow2.f32 %v2006_v30  ;;  %v1915_v61 = vsub.f32 0.0, %v1818_v47  ;;  %v1822_v51 = vadd.f32 %v1821_v13, %v3992_v55 }
 0x49f   :  { %v2991_v42 = vpop.eup %2990  ;;  %v2095_v43 = vadd.f32 1.0, %v2989_v53  ;;  %3008 = vpow2.f32 %v2008_v33  ;;  %v2018_v3 = vmul.f32 1.442695, %v1914_v57  ;;  %v1916_v0 = vsub.f32 0.0, %v1820_v59 }
 0x4a0   :  { %v2993_v46 = vpop.eup %2992  ;;  %3010 = vrcp.f32 %v2094_v16  ;;  %v2096_v15 = vadd.f32 1.0, %v2991_v42  ;;  %v1917_v5 = vsub.f32 0.0, %v1822_v51  ;;  %v2020_v6 = vmul.f32 1.442695, %v1915_v61 }
 0x4a1   :  { %3012 = vrcp.f32 %v2095_v43  ;;  %v2097_v54 = vadd.f32 1.0, %v2993_v46  ;;  %v2022_v12 = vmul.f32 1.442695, %v1916_v0 }
 0x4a2   :  { %v2995_v8 = vpop.eup %2994  ;;  %3014 = vrcp.f32 %v2096_v15  ;;  %v1825_v7 = vpop.f32.mrb[76].mxu0  ;;  %v2024_v39 = vmul.f32 1.442695, %v1917_v5 }
 0x4a3   :  { %v2997_v52 = vpop.eup %2996  ;;  %2282 = vst [vmem:[#allocation7 + $0xc0] sm:$0xff] %v2995_v8  ;;  %3016 = vrcp.f32 %v2097_v54  ;;  %v1826_v25 = vadd.f32 %v1825_v7, %v3990_v24  ;;  %v1827_v14 = vpop.f32.mrb[77].mxu0 }
 0x4a4   :  { %v2999_v48 = vpop.eup %2998  ;;  %2283 = vst [vmem:[#allocation7 + $0xc8] sm:$0xff] %v2997_v52  ;;  %3018 = vpow2.f32 %v2010_v21  ;;  %v1828_v27 = vadd.f32 %v1827_v14, %v3992_v55  ;;  %v1829_v28 = vpop.f32.mrb[78].mxu0 }
 0x4a5   :  { %v3001_v29 = vpop.eup %3000  ;;  %2284 = vst [vmem:[#allocation7 + $0xd0] sm:$0xff] %v2999_v48  ;;  %3020 = vpow2.f32 %v2012_v58  ;;  %v1918_v19 = vsub.f32 0.0, %v1826_v25  ;;  %v1830_v20 = vadd.f32 %v1829_v28, %v3990_v24  ;;  %v1831_v18 = vpop.f32.mrb[79].mxu0 }
 0x4a6   :  { %v3003_v60 = vpop.eup %3002  ;;  %2285 = vst [vmem:[#allocation7 + $0xd8] sm:$0xff] %v3001_v29  ;;  %3022 = vpow2.f32 %v2014_v32  ;;  %v1832_v41 = vadd.f32 %v1831_v18, %v3992_v55  ;;  %v1919_v36 = vsub.f32 0.0, %v1828_v27 }
 0x4a7   :  { %v3005_v4 = vpop.eup %3004  ;;  %v2098_v62 = vadd.f32 1.0, %v3003_v60  ;;  %3024 = vpow2.f32 %v2016_v38  ;;  %v2026_v31 = vmul.f32 1.442695, %v1918_v19  ;;  %v1920_v37 = vsub.f32 0.0, %v1830_v20 }
 0x4a8   :  { %v3007_v2 = vpop.eup %3006  ;;  %v2099_v50 = vadd.f32 1.0, %v3005_v4  ;;  %3026 = vpow2.f32 %v2018_v3  ;;  %v1921_v53 = vsub.f32 0.0, %v1832_v41  ;;  %v2028_v46 = vmul.f32 1.442695, %v1919_v36 }
 0x4a9   :  { %v3009_v1 = vpop.eup %3008  ;;  %3028 = vrcp.f32 %v2098_v62  ;;  %v2100_v63 = vadd.f32 1.0, %v3007_v2  ;;  %v2030_v26 = vmul.f32 1.442695, %v1920_v37 }
 0x4aa   :  { %v3011_v10 = vpop.eup %3010  ;;  %3030 = vrcp.f32 %v2099_v50  ;;  %v2101_v11 = vadd.f32 1.0, %v3009_v1  ;;  %v1835_v42 = vpop.f32.mrb[80].mxu0  ;;  %v2032_v45 = vmul.f32 1.442695, %v1921_v53 }
 0x4ab   :  { %v3013_v17 = vpop.eup %3012  ;;  %2286 = vst [vmem:[#allocation7 + $0xe0] sm:$0xff] %v3011_v10  ;;  %3032 = vrcp.f32 %v2100_v63  ;;  %v1836_v15 = vadd.f32 %v1835_v42, %v3990_v24  ;;  %v1837_v21 = vpop.f32.mrb[81].mxu0 }
 0x4ac   :  { %v3015_v30 = vpop.eup %3014  ;;  %2287 = vst [vmem:[#allocation7 + $0xe8] sm:$0xff] %v3013_v17  ;;  %3034 = vrcp.f32 %v2101_v11  ;;  %v1838_v8 = vadd.f32 %v1837_v21, %v3992_v55  ;;  %v1839_v32 = vpop.f32.mrb[82].mxu0 }
 0x4ad   :  { %v3017_v33 = vpop.eup %3016  ;;  %2288 = vst [vmem:[#allocation7 + $0xf0] sm:$0xff] %v3015_v30  ;;  %3036 = vpow2.f32 %v2020_v6  ;;  %v1922_v52 = vsub.f32 0.0, %v1836_v15  ;;  %v1840_v38 = vadd.f32 %v1839_v32, %v3990_v24  ;;  %v1841_v47 = vpop.f32.mrb[83].mxu0 }
 0x4ae   :  { %v3019_v40 = vpop.eup %3018  ;;  %2289 = vst [vmem:[#allocation7 + $0xf8] sm:$0xff] %v3017_v33  ;;  %3038 = vpow2.f32 %v2022_v12  ;;  %v1842_v48 = vadd.f32 %v1841_v47, %v3992_v55  ;;  %v1923_v13 = vsub.f32 0.0, %v1838_v8 }
 0x4af   :  { %v3021_v22 = vpop.eup %3020  ;;  %v2102_v23 = vadd.f32 1.0, %v3019_v40  ;;  %3040 = vpow2.f32 %v2024_v39  ;;  %v2034_v59 = vmul.f32 1.442695, %v1922_v52  ;;  %v1924_v61 = vsub.f32 0.0, %v1840_v38 }
 0x4b0   :  { %v3023_v9 = vpop.eup %3022  ;;  %v2103_v35 = vadd.f32 1.0, %v3021_v22  ;;  %3042 = vpow2.f32 %v2026_v31  ;;  %v1925_v3 = vsub.f32 0.0, %v1842_v48  ;;  %v2036_v50 = vmul.f32 1.442695, %v1923_v13 }
 0x4b1   :  { %v3025_v16 = vpop.eup %3024  ;;  %3044 = vrcp.f32 %v2102_v23  ;;  %v2104_v56 = vadd.f32 1.0, %v3023_v9  ;;  %v2038_v10 = vmul.f32 1.442695, %v1924_v61 }
 0x4b2   :  { %v3027_v43 = vpop.eup %3026  ;;  %3046 = vrcp.f32 %v2103_v35  ;;  %v2105_v44 = vadd.f32 1.0, %v3025_v16  ;;  %v1845_v62 = vpop.f32.mrb[84].mxu0  ;;  %v2040_v14 = vmul.f32 1.442695, %v1925_v3 }
 0x4b3   :  { %v3029_v54 = vpop.eup %3028  ;;  %3048 = vrcp.f32 %v2104_v56  ;;  %v2106_v58 = vadd.f32 1.0, %v3027_v43  ;;  %v1846_v1 = vadd.f32 %v1845_v62, %v3990_v24  ;;  %v1847_v63 = vpop.f32.mrb[85].mxu0 }
 0x4b4   :  { %v3031_v34 = vpop.eup %3030  ;;  %2290 = vst [vmem:[#allocation7 + $0x100] sm:$0xff] %v3029_v54  ;;  %3050 = vrcp.f32 %v2105_v44  ;;  %v1848_v11 = vadd.f32 %v1847_v63, %v3992_v55  ;;  %v1849_v12 = vpop.f32.mrb[86].mxu0 }
 0x4b5   :  { %v3033_v49 = vpop.eup %3032  ;;  %2291 = vst [vmem:[#allocation7 + $0x108] sm:$0xff] %v3031_v34  ;;  %3052 = vrcp.f32 %v2106_v58  ;;  %v1926_v17 = vsub.f32 0.0, %v1846_v1  ;;  %v1850_v39 = vadd.f32 %v1849_v12, %v3990_v24  ;;  %v1851_v27 = vpop.f32.mrb[87].mxu0 }
 0x4b6   :  { %v3035_v57 = vpop.eup %3034  ;;  %2292 = vst [vmem:[#allocation7 + $0x110] sm:$0xff] %v3033_v49  ;;  %3054 = vpow2.f32 %v2028_v46  ;;  %v1927_v30 = vsub.f32 0.0, %v1848_v11  ;;  %v1852_v19 = vadd.f32 %v1851_v27, %v3992_v55 }
 0x4b7   :  { %v3037_v29 = vpop.eup %3036  ;;  %2293 = vst [vmem:[#allocation7 + $0x118] sm:$0xff] %v3035_v57  ;;  %3056 = vpow2.f32 %v2030_v26  ;;  %v2042_v18 = vmul.f32 1.442695, %v1926_v17  ;;  %v1928_v33 = vsub.f32 0.0, %v1850_v39 }
 0x4b8   :  { %v3039_v51 = vpop.eup %3038  ;;  %v2107_v60 = vadd.f32 1.0, %v3037_v29  ;;  %3058 = vpow2.f32 %v2032_v45  ;;  %v2044_v40 = vmul.f32 1.442695, %v1927_v30  ;;  %v1929_v31 = vsub.f32 0.0, %v1852_v19 }
 0x4b9   :  { %v3041_v0 = vpop.eup %3040  ;;  %v2108_v4 = vadd.f32 1.0, %v3039_v51  ;;  %3060 = vpow2.f32 %v2034_v59  ;;  %v2046_v53 = vmul.f32 1.442695, %v1928_v33 }
 0x4ba   :  { %v3043_v5 = vpop.eup %3042  ;;  %3062 = vrcp.f32 %v2107_v60  ;;  %v2109_v2 = vadd.f32 1.0, %v3041_v0  ;;  %v1855_v37 = vpop.f32.mrb[88].mxu0  ;;  %v2048_v44 = vmul.f32 1.442695, %v1929_v31 }
 0x4bb   :  { %v3045_v6 = vpop.eup %3044  ;;  %3064 = vrcp.f32 %v2108_v4  ;;  %v2110_v7 = vadd.f32 1.0, %v3043_v5  ;;  %v1856_v16 = vadd.f32 %v1855_v37, %v3990_v24  ;;  %v1857_v56 = vpop.f32.mrb[89].mxu0 }
 0x4bc   :  { %v3047_v25 = vpop.eup %3046  ;;  %2294 = vst [vmem:[#allocation7 + $0x120] sm:$0xff] %v3045_v6  ;;  %3066 = vrcp.f32 %v2109_v2  ;;  %v1858_v46 = vadd.f32 %v1857_v56, %v3992_v55  ;;  %v1859_v15 = vpop.f32.mrb[90].mxu0 }
 0x4bd   :  { %v3049_v28 = vpop.eup %3048  ;;  %2295 = vst [vmem:[#allocation7 + $0x128] sm:$0xff] %v3047_v25  ;;  %3068 = vrcp.f32 %v2110_v7  ;;  %v1930_v58 = vsub.f32 0.0, %v1856_v16  ;;  %v1860_v26 = vadd.f32 %v1859_v15, %v3990_v24  ;;  %v1861_v8 = vpop.f32.mrb[91].mxu0 }
 0x4be   :  { %v3051_v20 = vpop.eup %3050  ;;  %2296 = vst [vmem:[#allocation7 + $0x130] sm:$0xff] %v3049_v28  ;;  %3070 = vpow2.f32 %v2036_v50  ;;  %v1931_v34 = vsub.f32 0.0, %v1858_v46  ;;  %v1862_v45 = vadd.f32 %v1861_v8, %v3992_v55 }
 0x4bf   :  { %v3053_v41 = vpop.eup %3052  ;;  %2297 = vst [vmem:[#allocation7 + $0x138] sm:$0xff] %v3051_v20  ;;  %3072 = vpow2.f32 %v2038_v10  ;;  %v2050_v38 = vmul.f32 1.442695, %v1930_v58  ;;  %v1932_v47 = vsub.f32 0.0, %v1860_v26 }
 0x4c0   :  { %v3055_v36 = vpop.eup %3054  ;;  %2298 = vst [vmem:[#allocation7 + $0x140] sm:$0xff] %v3053_v41  ;;  %3074 = vpow2.f32 %v2040_v14  ;;  %v2052_v48 = vmul.f32 1.442695, %v1931_v34  ;;  %v1933_v57 = vsub.f32 0.0, %v1862_v45 }
 0x4c1   :  { %v3057_v22 = vpop.eup %3056  ;;  %v2111_v23 = vadd.f32 1.0, %v3055_v36  ;;  %3076 = vpow2.f32 %v2042_v18  ;;  %v2054_v3 = vmul.f32 1.442695, %v1932_v47 }
 0x4c2   :  { %v3059_v9 = vpop.eup %3058  ;;  %v2112_v35 = vadd.f32 1.0, %v3057_v22  ;;  %3078 = vpow2.f32 %v2044_v40  ;;  %v1865_v61 = vpop.f32.mrb[92].mxu0  ;;  %v2056_v2 = vmul.f32 1.442695, %v1933_v57 }
 0x4c3   :  { %v3061_v42 = vpop.eup %3060  ;;  %3080 = vrcp.f32 %v2111_v23  ;;  %v2113_v43 = vadd.f32 1.0, %v3059_v9  ;;  %v1866_v0 = vadd.f32 %v1865_v61, %v3990_v24  ;;  %v1867_v4 = vpop.f32.mrb[93].mxu0 }
 0x4c4   :  { %v3063_v21 = vpop.eup %3062  ;;  %3082 = vrcp.f32 %v2112_v35  ;;  %v2114_v54 = vadd.f32 1.0, %v3061_v42  ;;  %v1868_v50 = vadd.f32 %v1867_v4, %v3992_v55  ;;  %v1869_v1 = vpop.f32.mrb[94].mxu0 }
 0x4c5   :  { %v3065_v32 = vpop.eup %3064  ;;  %2299 = vst [vmem:[#allocation7 + $0x148] sm:$0xff] %v3063_v21  ;;  %3084 = vrcp.f32 %v2113_v43  ;;  %v1934_v7 = vsub.f32 0.0, %v1866_v0  ;;  %v1870_v10 = vadd.f32 %v1869_v1, %v3990_v24  ;;  %v1871_v11 = vpop.f32.mrb[95].mxu0 }
 0x4c6   :  { %v3067_v52 = vpop.eup %3066  ;;  %2300 = vst [vmem:[#allocation7 + $0x150] sm:$0xff] %v3065_v32  ;;  %3086 = vrcp.f32 %v2114_v54  ;;  %v1935_v14 = vsub.f32 0.0, %v1868_v50  ;;  %v1872_v17 = vadd.f32 %v1871_v11, %v3992_v55 }
 0x4c7   :  { %v3069_v49 = vpop.eup %3068  ;;  %2301 = vst [vmem:[#allocation7 + $0x158] sm:$0xff] %v3067_v52  ;;  %3088 = vpow2.f32 %v2046_v53  ;;  %v2058_v27 = vmul.f32 1.442695, %v1934_v7  ;;  %v1936_v20 = vsub.f32 0.0, %v1870_v10 }
 0x4c8   :  { %v3071_v59 = vpop.eup %3070  ;;  %2302 = vst [vmem:[#allocation7 + $0x160] sm:$0xff] %v3069_v49  ;;  %3090 = vpow2.f32 %v2048_v44  ;;  %v2060_v30 = vmul.f32 1.442695, %v1935_v14  ;;  %v1937_v18 = vsub.f32 0.0, %v1872_v17 }
 0x4c9   :  { %v3073_v13 = vpop.eup %3072  ;;  %v2115_v29 = vadd.f32 1.0, %v3071_v59  ;;  %3092 = vpow2.f32 %v2050_v38  ;;  %v2062_v22 = vmul.f32 1.442695, %v1936_v20 }
 0x4ca   :  { %v3075_v51 = vpop.eup %3074  ;;  %v2116_v60 = vadd.f32 1.0, %v3073_v13  ;;  %3094 = vpow2.f32 %v2052_v48  ;;  %v2064_v9 = vmul.f32 1.442695, %v1937_v18 }
 0x4cb   :  { %v3077_v62 = vpop.eup %3076  ;;  %3096 = vrcp.f32 %v2115_v29  ;;  %v2117_v5 = vadd.f32 1.0, %v3075_v51 }
 0x4cc   :  { %v3079_v63 = vpop.eup %3078  ;;  %3098 = vrcp.f32 %v2116_v60  ;;  %v2118_v6 = vadd.f32 1.0, %v3077_v62 }
 0x4cd   :  { %v3081_v12 = vpop.eup %3080  ;;  %3100 = vrcp.f32 %v2117_v5  ;;  %v2119_v25 = vadd.f32 1.0, %v3079_v63 }
 0x4ce   :  { %v3083_v39 = vpop.eup %3082  ;;  %2303 = vst [vmem:[#allocation7 + $0x168] sm:$0xff] %v3081_v12  ;;  %3102 = vrcp.f32 %v2118_v6 }
 0x4cf   :  { %v3085_v28 = vpop.eup %3084  ;;  %2304 = vst [vmem:[#allocation7 + $0x170] sm:$0xff] %v3083_v39  ;;  %3104 = vrcp.f32 %v2119_v25 }
 0x4d0   :  { %v3087_v19 = vpop.eup %3086  ;;  %2305 = vst [vmem:[#allocation7 + $0x178] sm:$0xff] %v3085_v28  ;;  %3106 = vpow2.f32 %v2054_v3 }
 0x4d1   :  { %v3089_v24 = vpop.eup %3088  ;;  %2306 = vst [vmem:[#allocation7 + $0x180] sm:$0xff] %v3087_v19  ;;  %3108 = vpow2.f32 %v2056_v2 }
 0x4d2   :  { %v3091_v33 = vpop.eup %3090  ;;  %v2120_v41 = vadd.f32 1.0, %v3089_v24  ;;  %3110 = vpow2.f32 %v2058_v27 }
 0x4d3   :  { %v3093_v55 = vpop.eup %3092  ;;  %v2121_v40 = vadd.f32 1.0, %v3091_v33  ;;  %3112 = vpow2.f32 %v2060_v30 }
 0x4d4   :  { %v3095_v31 = vpop.eup %3094  ;;  %3114 = vrcp.f32 %v2120_v41  ;;  %v2122_v36 = vadd.f32 1.0, %v3093_v55 }
 0x4d5   :  { %v3097_v23 = vpop.eup %3096  ;;  %3116 = vrcp.f32 %v2121_v40  ;;  %v2123_v37 = vadd.f32 1.0, %v3095_v31 }
 0x4d6   :  { %v3099_v35 = vpop.eup %3098  ;;  %2307 = vst [vmem:[#allocation7 + $0x188] sm:$0xff] %v3097_v23  ;;  %3118 = vrcp.f32 %v2122_v36 }
 0x4d7   :  { %v3101_v53 = vpop.eup %3100  ;;  %2308 = vst [vmem:[#allocation7 + $0x190] sm:$0xff] %v3099_v35  ;;  %3120 = vrcp.f32 %v2123_v37 }
 0x4d8   :  { %v3103_v16 = vpop.eup %3102  ;;  %2309 = vst [vmem:[#allocation7 + $0x198] sm:$0xff] %v3101_v53  ;;  %3122 = vpow2.f32 %v2062_v22 }
 0x4d9   :  { %v3105_v56 = vpop.eup %3104  ;;  %2310 = vst [vmem:[#allocation7 + $0x1a0] sm:$0xff] %v3103_v16  ;;  %3124 = vpow2.f32 %v2064_v9 }
 0x4da   :  { %v3107_v42 = vpop.eup %3106  ;;  %2311 = vst [vmem:[#allocation7 + $0x1a8] sm:$0xff] %v3105_v56 }
 0x4db   :  { %v3109_v43 = vpop.eup %3108  ;;  %v2124_v44 = vadd.f32 1.0, %v3107_v42 }
 0x4dc   :  { %v3111_v46 = vpop.eup %3110  ;;  %v2125_v15 = vadd.f32 1.0, %v3109_v43 }
 0x4dd   :  { %v3113_v21 = vpop.eup %3112  ;;  %3126 = vrcp.f32 %v2124_v44  ;;  %v2126_v54 = vadd.f32 1.0, %v3111_v46 }
 0x4de   :  { %v3115_v58 = vpop.eup %3114  ;;  %3128 = vrcp.f32 %v2125_v15  ;;  %v2127_v26 = vadd.f32 1.0, %v3113_v21 }
 0x4df   :  { %v3117_v8 = vpop.eup %3116  ;;  %2312 = vst [vmem:[#allocation7 + $0x1b0] sm:$0xff] %v3115_v58  ;;  %3130 = vrcp.f32 %v2126_v54 }
 0x4e0   :  { %v3119_v32 = vpop.eup %3118  ;;  %2313 = vst [vmem:[#allocation7 + $0x1b8] sm:$0xff] %v3117_v8  ;;  %3132 = vrcp.f32 %v2127_v26 }
 0x4e1   :  { %v3121_v34 = vpop.eup %3120  ;;  %2314 = vst [vmem:[#allocation7 + $0x1c0] sm:$0xff] %v3119_v32 }
 0x4e2   :  { %v3123_v45 = vpop.eup %3122  ;;  %2315 = vst [vmem:[#allocation7 + $0x1c8] sm:$0xff] %v3121_v34 }
 0x4e3   :  { %v3125_v52 = vpop.eup %3124  ;;  %v2128_v38 = vadd.f32 1.0, %v3123_v45 }
 0x4e4   :  { %v2129_v47 = vadd.f32 1.0, %v3125_v52 }
 0x4e5   :  { %3134 = vrcp.f32 %v2128_v38 }
 0x4e6   :  { %3136 = vrcp.f32 %v2129_v47 }
 0x4e7   :  { %v3127_v49 = vpop.eup %3126 }
 0x4e8   :  { %v3129_v48 = vpop.eup %3128  ;;  %2316 = vst [vmem:[#allocation7 + $0x1d0] sm:$0xff] %v3127_v49 }
 0x4e9   :  { %v3131_v57 = vpop.eup %3130  ;;  %2317 = vst [vmem:[#allocation7 + $0x1d8] sm:$0xff] %v3129_v48 }
 0x4ea   :  { %v3133_v59 = vpop.eup %3132  ;;  %2318 = vst [vmem:[#allocation7 + $0x1e0] sm:$0xff] %v3131_v57 }
 0x4eb   :  { %2319 = vst [vmem:[#allocation7 + $0x1e8] sm:$0xff] %v3133_v59 }
 0x4ef   :  { %v3135_v13 = vpop.eup %3134 }
 0x4f0   :  { %v3137_v29 = vpop.eup %3136  ;;  %2320 = vst [vmem:[#allocation7 + $0x1f0] sm:$0xff] %v3135_v13 }
 0x4f1   :  { %2321 = vst [vmem:[#allocation7 + $0x1f8] sm:$0xff] %v3137_v29 }
 0x4f2   :  { %3215 = shalt.err (!%p3212_p0)
}
 0x4f3   :  { %s3216_s22 = scalar_lea.hbm %s4095_s7, 8192 }
 0x4f4   :  { %p3217_p1 = scmp.ne.s32.totalorder %s4095_s7, %s3216_s22  ;;  %p3220_p2 = scmp.lt.u32.totalorder %s3216_s22, %s4095_s7 }
 0x4f6   :  { %p3222_p3 = pnand %p3220_p2, %p3217_p1 }
 0x4f8   :  { %3225 = shalt.err (!%p3222_p3)
}
 0x4f9   :  { %2333 = dma.vmem_to_hbm [thread:$0]  %s2328_s0, 8192, %s4095_s7, [#allocation4], %s3235_s15, %s3235_s15, %s3236_s16  }
 0x4fa   :  { %3230 = dma.done.wait [#allocation4], 8192  }
 0x4fb   :  { %3231 = vsyncadd [#allocation4], 4294959104 }
 0x4fc   :  { %3232 = dma.done.wait [#allocation9], 4096  }
 0x4fd   :  { %3233 = vsyncadd [#allocation9], 4294963200 }
 0x4fe   :  { %2352 = vsyncpa [#allocation3], 1 }
 0x4ff   :  { %2353 = vsyncpa [#allocation6], 1 }
 0x500   :  { %2354 = vsyncpa [#allocation4], 1 }
 0x501   :  { %2355 = vsyncpa [#allocation9], 1 }

</bundles_post_ra>
